<compile_context>
chip_gen: v6e
topology: v6e:2x2x1
jax: 0.10.0
libtpu: 0.0.40
codegen_flags: <defaults>
</compile_context>

<pallas_src>
import functools

import jax
import jax.numpy as jnp
from jax import lax
from jax.experimental import pallas as pl
from jax.experimental.pallas import tpu as pltpu


def _largest_divisor_tile(n, target, step):
    """Largest multiple of `step` dividing n and <= target (else n itself).

    NOTE: falls back to n itself when no multiple-of-`step` divisor <= target
    exists (e.g. prime n); callers should keep such shapes modest or pad.
    """
    if n <= target:
        return n
    t = (target // step) * step
    while t >= step:
        if n % t == 0:
            return t
        t -= step
    return n


def _layernorm(x, gamma, beta, eps):
    """LayerNorm over the last axis (biased variance, like nn.LayerNorm)."""
    mean = jnp.mean(x, axis=-1, keepdims=True)
    xc = x - mean
    var = jnp.mean(xc * xc, axis=-1, keepdims=True)
    return xc * lax.rsqrt(var + eps) * gamma + beta          # EUP rsqrt


# -----------------------------------------------------------------------------
# Generic PreNorm3 path: standalone Pallas LayerNorm (used when fn is opaque).
# -----------------------------------------------------------------------------
def _layernorm_kernel(x_ref, g_ref, b_ref, o_ref, *, eps):
    o_ref[...] = _layernorm(x_ref[...], g_ref[0], b_ref[0], eps).astype(o_ref.dtype)


def layernorm_forward(x, gamma, beta, *, eps=1e-5, row_block=2048):
    orig_shape = x.shape
    dim = orig_shape[-1]
    x2 = x.reshape(-1, dim)                 # many rows per grid step
    rows = x2.shape[0]
    # Large row tile (fewer grid steps, ~0.35 us/step overhead amortized).
    tm = _largest_divisor_tile(rows, row_block, 8)
    out = pl.pallas_call(
        functools.partial(_layernorm_kernel, eps=eps),
        out_shape=jax.ShapeDtypeStruct((rows, dim), x.dtype),
        grid=(rows // tm,),
        in_specs=[
            pl.BlockSpec((tm, dim), lambda i: (i, 0)),
            pl.BlockSpec((1, dim), lambda i: (0, 0)),
            pl.BlockSpec((1, dim), lambda i: (0, 0)),
        ],
        # TODO(synk): dim=32 < 128 lanes -> masked stores; padding dim to 128
        # in the model layout would make this store lane-dense.
        out_specs=pl.BlockSpec((tm, dim), lambda i: (i, 0)),
        compiler_params=pltpu.CompilerParams(dimension_semantics=("parallel",)),
    )(x2, gamma.reshape(1, dim), beta.reshape(1, dim))
    return out.reshape(orig_shape)


def prenorm3_forward(x, idx, mask, fn, gamma, beta, *, eps=1e-5):
    """Generic PreNorm3.forward: fn(LayerNorm(x), idx, mask) (un-fused path)."""
    return fn(layernorm_forward(x, gamma, beta, eps=eps), idx, mask)


# -----------------------------------------------------------------------------
# Fused PreNorm3(Attention): LayerNorm + flash attention in ONE pallas_call.
# -----------------------------------------------------------------------------
def _prenorm_flash_attn_kernel(xq_ref, xkv_ref, g_ref, b_ref, wq_ref, wkv_ref,
                               wo_ref, bo_ref, o_ref,
                               q_s, m_s, l_s, acc_s, *, heads, dim_head, eps):
    inner = heads * dim_head
    kv_i = pl.program_id(2)
    g = g_ref[0]
    b = b_ref[0]

    @pl.when(kv_i == 0)
    def _init():
        # Fused PreNorm3 LayerNorm on the q rows (no HBM round-trip).
        xq = _layernorm(xq_ref[0], g, b, eps)
        # One wide (tq, dim) @ (dim, inner) matmul for all heads' Q;
        # the softmax scale is already folded into wq wrapper-side.
        q_s[...] = jnp.dot(xq, wq_ref[...], preferred_element_type=jnp.float32)
        m_s[...] = jnp.full(m_s.shape, -jnp.inf, dtype=m_s.dtype)
        l_s[...] = jnp.zeros(l_s.shape, dtype=l_s.dtype)
        acc_s[...] = jnp.zeros(acc_s.shape, dtype=acc_s.dtype)

    # Fused LayerNorm on the kv rows (recomputed per q block: cheap VPU/EUP
    # work hidden under the exp/dot stream, vs. a full extra HBM round-trip).
    xkv = _layernorm(xkv_ref[0], g, b, eps)
    # One (tk, dim) @ (dim, 2*inner) matmul for all heads' K and V (wk||wv).
    kv = jnp.dot(xkv, wkv_ref[...], preferred_element_type=jnp.float32)
    q_all = q_s[...]                                           # (tq, inner)

    # Per-head online softmax.  `heads` is tiny; offsets are static multiples
    # of 8 lanes (no dynamic-lane relayout) and every per-head result is
    # written straight to the packed scratch, so only q/k/v stay live across
    # iterations.
    for h in range(heads):
        hs = slice(h * dim_head, (h + 1) * dim_head)
        k_h = kv[:, h * dim_head:(h + 1) * dim_head]           # (tk, dh)
        v_h = kv[:, inner + h * dim_head:inner + (h + 1) * dim_head]
        # q @ k^T without transposing k (transposed-RHS matmul on the MXU).
        s = lax.dot_general(q_all[:, hs], k_h, (((1,), (1,)), ((), ())),
                            preferred_element_type=jnp.float32)   # (tq, tk)
        m_prev = m_s[:, h:h + 1]
        m_new = jnp.maximum(m_prev, jnp.max(s, axis=-1, keepdims=True))
        alpha = jnp.exp(m_prev - m_new)
        p = jnp.exp(s - m_new)
        l_s[:, h:h + 1] = alpha * l_s[:, h:h + 1] + jnp.sum(p, axis=-1,
                                                            keepdims=True)
        # NOTE: with bf16 activations, cast p to bf16 here (keep f32
        # accumulation via preferred_element_type) to hit the v6e/v7x bf16
        # MXU path; on v5e keep the softmax math in f32 (no bf16 VPU/EUP).
        acc_s[:, hs] = alpha * acc_s[:, hs] + jnp.dot(
            p, v_h, preferred_element_type=jnp.float32)
        m_s[:, h:h + 1] = m_new

    @pl.when(kv_i == pl.num_programs(2) - 1)
    def _finalize():
        # approx reciprocal -> EUP slot (nearly free); ~1e-3 rel error,
        # fine for inference (switch to approx=False for training).
        inv = pl.reciprocal(l_s[...], approx=True)             # (tq, heads)
        for h in range(heads):
            hs = slice(h * dim_head, (h + 1) * dim_head)
            acc_s[:, hs] = acc_s[:, hs] * inv[:, h:h + 1]
        # Single (tq, inner) @ (inner, dim) output projection.  idx is folded
        # wrapper-side (wo *= idx**2, bo *= idx): no SMEM operand, no per-tile
        # VPU scaling.
        y = jnp.dot(acc_s[...], wo_ref[...],
                    preferred_element_type=jnp.float32) + bo_ref[0]
        # TODO(synk): dim=32 < 128 lanes makes this a masked vst; a lane-dense
        # store needs dim padded to 128 in the model layout (or an in-kernel
        # (tq,32)->(tq*32/128,128) relayout), which we avoid for lowering
        # safety.
        o_ref[0] = y.astype(o_ref.dtype)


def prenorm3_attention_forward(x, idx, mask=None, *, gamma, beta, w_qkv, w_out,
                               b_out, heads, dim_head, eps=1e-5,
                               q_block=256, kv_block=512):
    """Fused PreNorm3(Attention).forward == Attention(LayerNorm(x), idx, mask)."""
    # TODO(synk): the `mask is not None` branch of the original Attention is
    # shape-inconsistent (fine_tune* expects inner_dim features while the same
    # tensor is later flattened and asserted to have length n); only the
    # mask=None path is implemented.
    if mask is not None:
        raise NotImplementedError("mask branch not implemented (see TODO).")

    b, n, dim = x.shape
    inner = heads * dim_head
    assert w_qkv.shape == (dim, 3 * inner) and w_out.shape == (inner, dim)
    scale = float(dim) ** (-0.5)            # NOTE: module scales by dim**-0.5.
    idx = jnp.asarray(idx, jnp.float32)

    # One-time wrapper-side weight prep:
    #   * softmax scale folded into Q weights,
    #   * wk||wv concatenated so all heads' K and V come from one matmul,
    #   * idx folded into the output projection: (idx*y+bo)*idx = idx^2*wo,
    #     idx*bo.
    w_q, w_k, w_v = jnp.split(w_qkv, 3, axis=-1)               # (dim, inner) each
    wq = w_q * scale                                           # (dim, inner)
    wkv = jnp.concatenate([w_k, w_v], axis=-1)                 # (dim, 2*inner)
    wo = w_out * (idx * idx)                                   # (inner, dim)
    bo = (b_out * idx).reshape(1, dim)
    gamma2 = gamma.reshape(1, dim)
    beta2 = beta.reshape(1, dim)

    tq = _largest_divisor_tile(n, q_block, 8)
    # v7x megacore: make sure there are >= 2 "parallel" grid units so both
    # TensorCores get work (no effect on single-TC v5e/v6e).
    while b * (n // tq) < 2 and tq % 16 == 0 and n % (tq // 2) == 0:
        tq //= 2
    tk = _largest_divisor_tile(n, kv_block, 8)
    grid = (b, n // tq, n // tk)                               # kv (reduction) last

    # Rough VMEM budget: double-buffered x tiles + packed scratch + per-head
    # (tq, tk) score/probability intermediates.  Only raise the scoped limit
    # when actually needed (keeps headroom on v7x's 64 MiB physical VMEM).
    compiler_kwargs = dict(
        dimension_semantics=("parallel", "parallel", "arbitrary"))
    est_bytes = (2 * 2 * (tq + tk) * dim * x.dtype.itemsize
                 + (2 * tq * inner + 2 * tq * heads) * 4
                 + 4 * tq * tk * 4)
    if est_bytes > 24 * 1024 * 1024:
        compiler_kwargs["vmem_limit_bytes"] = int(
            min(2 * est_bytes, 100 * 1024 * 1024))

    kernel = functools.partial(_prenorm_flash_attn_kernel, heads=heads,
                               dim_head=dim_head, eps=eps)
    return pl.pallas_call(
        kernel,
        out_shape=jax.ShapeDtypeStruct((b, n, dim), x.dtype),
        grid=grid,
        in_specs=[
            pl.BlockSpec((1, tq, dim), lambda bi, qi, ki: (bi, qi, 0)),   # x (q rows)
            pl.BlockSpec((1, tk, dim), lambda bi, qi, ki: (bi, ki, 0)),   # x (kv rows)
            pl.BlockSpec((1, dim), lambda bi, qi, ki: (0, 0)),            # LN gamma
            pl.BlockSpec((1, dim), lambda bi, qi, ki: (0, 0)),            # LN beta
            pl.BlockSpec((dim, inner), lambda bi, qi, ki: (0, 0)),        # wq (scaled)
            pl.BlockSpec((dim, 2 * inner), lambda bi, qi, ki: (0, 0)),    # wk||wv
            pl.BlockSpec((inner, dim), lambda bi, qi, ki: (0, 0)),        # wo (idx^2)
            pl.BlockSpec((1, dim), lambda bi, qi, ki: (0, 0)),            # bo (idx)
        ],
        out_specs=pl.BlockSpec((1, tq, dim), lambda bi, qi, ki: (bi, qi, 0)),
        scratch_shapes=[
            pltpu.VMEM((tq, inner), jnp.float32),     # Q, lane-packed
            pltpu.VMEM((tq, heads), jnp.float32),     # running max, lane-packed
            pltpu.VMEM((tq, heads), jnp.float32),     # running denom, lane-packed
            pltpu.VMEM((tq, inner), jnp.float32),     # output acc, lane-packed
        ],
        compiler_params=pltpu.CompilerParams(**compiler_kwargs),
    )(x, x, gamma2, beta2, wq, wkv, wo, bo)


# -----------------------------------------------------------------------------
# Pure-JAX references.
# -----------------------------------------------------------------------------
def layernorm_reference(x, gamma, beta, eps=1e-5):
    return _layernorm(x, gamma, beta, eps)


def attention_reference(x, idx, w_qkv, w_out, b_out, *, heads, dim_head):
    b, n, dim = x.shape
    inner = heads * dim_head
    scale = float(dim) ** (-0.5)
    qkv = x @ w_qkv
    q, k, v = jnp.split(qkv, 3, axis=-1)

    def rearr(t):                                    # b n (h d) -> b h n d
        return jnp.transpose(t.reshape(b, n, heads, dim_head), (0, 2, 1, 3))

    q, k, v = rearr(q), rearr(k), rearr(v)
    dots = jnp.einsum('bhid,bhjd->bhij', q, k) * scale
    attn = jax.nn.softmax(dots, axis=-1) * idx
    out = jnp.einsum('bhij,bhjd->bhid', attn, v)
    out = jnp.transpose(out, (0, 2, 1, 3)).reshape(b, n, inner)
    return (out @ w_out + b_out) * idx


def prenorm3_reference(x, idx, mask, gamma, beta, w_qkv, w_out, b_out, *,
                       heads, dim_head):
    xn = layernorm_reference(x, gamma, beta)
    return attention_reference(xn, idx, w_qkv, w_out, b_out,
                               heads=heads, dim_head=dim_head)


if __name__ == "__main__":
    # Small shapes: batch=2, seq=8, dim=32, heads=4, dim_head=8 -> inner=32.
    B, N, DIM = 2, 8, 32
    HEADS, DIM_HEAD = 4, 8
    INNER = HEADS * DIM_HEAD

    key = jax.random.PRNGKey(0)
    kx, kg, kb, kq, ko, kb2 = jax.random.split(key, 6)

    x = jax.random.normal(kx, (B, N, DIM), dtype=jnp.float32)
    idx = jnp.float32(0.7)
    mask = None

    gamma = 1.0 + 0.1 * jax.random.normal(kg, (DIM,), dtype=jnp.float32)
    beta = 0.1 * jax.random.normal(kb, (DIM,), dtype=jnp.float32)
    w_qkv = jax.random.normal(kq, (DIM, 3 * INNER), dtype=jnp.float32) * DIM ** -0.5
    w_out = jax.random.normal(ko, (INNER, DIM), dtype=jnp.float32) * INNER ** -0.5
    b_out = jax.random.normal(kb2, (DIM,), dtype=jnp.float32) * 0.01

    # Fused PreNorm3(Attention) forward: LayerNorm + flash attention, one call.
    y = prenorm3_attention_forward(
        x, idx, mask, gamma=gamma, beta=beta, w_qkv=w_qkv, w_out=w_out,
        b_out=b_out, heads=HEADS, dim_head=DIM_HEAD)
    y = jax.block_until_ready(y)

    y_ref = prenorm3_reference(x, idx, mask, gamma, beta, w_qkv, w_out, b_out,
                               heads=HEADS, dim_head=DIM_HEAD)
    assert y.shape == (B, N, DIM)
    # Tolerance slightly loosened for pl.reciprocal(approx=True) in softmax.
    assert jnp.allclose(y, y_ref, atol=5e-3, rtol=5e-3), "mismatch vs reference"

    # Generic (un-fused) PreNorm3 norm path also exercised.
    xn = jax.block_until_ready(layernorm_forward(x, gamma, beta))
    assert jnp.allclose(xn, layernorm_reference(x, gamma, beta),
                        atol=1e-4, rtol=1e-4), "layernorm mismatch"

    print("KERNEL_OK")
</pallas_src>

<mosaic_0001>
module attributes {stable_mosaic.version = 11 : i64} {
  func.func @_prenorm_flash_attn_kernel(%arg0: i32, %arg1: i32, %arg2: i32, %arg3: memref<1x8x32xf32, #tpu.memory_space<vmem>>, %arg4: memref<1x8x32xf32, #tpu.memory_space<vmem>>, %arg5: memref<1x32xf32, #tpu.memory_space<vmem>>, %arg6: memref<1x32xf32, #tpu.memory_space<vmem>>, %arg7: memref<32x32xf32, #tpu.memory_space<vmem>>, %arg8: memref<32x64xf32, #tpu.memory_space<vmem>>, %arg9: memref<32x32xf32, #tpu.memory_space<vmem>>, %arg10: memref<1x32xf32, #tpu.memory_space<vmem>>, %arg11: memref<1x8x32xf32, #tpu.memory_space<vmem>>, %arg12: memref<8x32xf32, #tpu.memory_space<vmem>>, %arg13: memref<8x4xf32, #tpu.memory_space<vmem>>, %arg14: memref<8x4xf32, #tpu.memory_space<vmem>>, %arg15: memref<8x32xf32, #tpu.memory_space<vmem>>) attributes {dimension_semantics = [#tpu.dimension_semantics<parallel>, #tpu.dimension_semantics<parallel>, #tpu.dimension_semantics<arbitrary>], iteration_bounds = array<i64: 2, 1, 1>, scalar_prefetch = 0 : i64, scratch_operands = 4 : i64, tpu.core_type = #tpu.core_type<tc>, window_params = [{transform_indices = @transform_0, window_bounds = array<i64: 1, 8, 32>}, {transform_indices = @transform_1, window_bounds = array<i64: 1, 8, 32>}, {pipeline_mode = #tpu.pipeline_mode<synchronous>, transform_indices = @transform_2, window_bounds = array<i64: 1, 32>}, {pipeline_mode = #tpu.pipeline_mode<synchronous>, transform_indices = @transform_3, window_bounds = array<i64: 1, 32>}, {pipeline_mode = #tpu.pipeline_mode<synchronous>, transform_indices = @transform_4, window_bounds = array<i64: 32, 32>}, {pipeline_mode = #tpu.pipeline_mode<synchronous>, transform_indices = @transform_5, window_bounds = array<i64: 32, 64>}, {pipeline_mode = #tpu.pipeline_mode<synchronous>, transform_indices = @transform_6, window_bounds = array<i64: 32, 32>}, {pipeline_mode = #tpu.pipeline_mode<synchronous>, transform_indices = @transform_7, window_bounds = array<i64: 1, 32>}, {transform_indices = @transform_8, window_bounds = array<i64: 1, 8, 32>}]} {
    %c0 = arith.constant 0 : index
    %c0_0 = arith.constant 0 : index
    %0 = vector.load %arg5[%c0, %c0_0] : memref<1x32xf32, #tpu.memory_space<vmem>>, vector<1x32xf32>
    %1 = vector.shape_cast %0 : vector<1x32xf32> to vector<32xf32>
    %c0_1 = arith.constant 0 : index
    %c0_2 = arith.constant 0 : index
    %2 = vector.load %arg6[%c0_1, %c0_2] : memref<1x32xf32, #tpu.memory_space<vmem>>, vector<1x32xf32>
    %3 = vector.shape_cast %2 : vector<1x32xf32> to vector<32xf32>
    %c0_i32 = arith.constant 0 : i32
    %4 = arith.cmpi eq, %arg2, %c0_i32 : i32
    %5 = arith.extui %4 : i1 to i32
    %c0_i32_3 = arith.constant 0 : i32
    %6 = arith.cmpi ne, %5, %c0_i32_3 : i32
    scf.if %6 {
      %c0_76 = arith.constant 0 : index
      %c0_77 = arith.constant 0 : index
      %c0_78 = arith.constant 0 : index
      %141 = vector.load %arg3[%c0_76, %c0_77, %c0_78] : memref<1x8x32xf32, #tpu.memory_space<vmem>>, vector<1x8x32xf32>
      %142 = vector.shape_cast %141 : vector<1x8x32xf32> to vector<8x32xf32>
      %cst_79 = arith.constant dense<0.000000e+00> : vector<8xf32>
      %143 = vector.multi_reduction <add>, %142, %cst_79 [1] : vector<8x32xf32> to vector<8xf32>
      %144 = vector.shape_cast %143 : vector<8xf32> to vector<8x1xf32>
      %cst_80 = arith.constant 3.200000e+01 : f32
      %145 = vector.broadcast %cst_80 : f32 to vector<8x1xf32>
      %146 = arith.divf %144, %145 : vector<8x1xf32>
      %147 = vector.broadcast %146 : vector<8x1xf32> to vector<8x32xf32>
      %148 = arith.subf %142, %147 : vector<8x32xf32>
      %149 = arith.mulf %148, %148 : vector<8x32xf32>
      %cst_81 = arith.constant dense<0.000000e+00> : vector<8xf32>
      %150 = vector.multi_reduction <add>, %149, %cst_81 [1] : vector<8x32xf32> to vector<8xf32>
      %151 = vector.shape_cast %150 : vector<8xf32> to vector<8x1xf32>
      %cst_82 = arith.constant 3.200000e+01 : f32
      %152 = vector.broadcast %cst_82 : f32 to vector<8x1xf32>
      %153 = arith.divf %151, %152 : vector<8x1xf32>
      %cst_83 = arith.constant 9.99999974E-6 : f32
      %154 = vector.broadcast %cst_83 : f32 to vector<8x1xf32>
      %155 = arith.addf %153, %154 : vector<8x1xf32>
      %156 = math.rsqrt %155 : vector<8x1xf32>
      %157 = vector.broadcast %156 : vector<8x1xf32> to vector<8x32xf32>
      %158 = arith.mulf %148, %157 : vector<8x32xf32>
      %159 = vector.shape_cast %1 : vector<32xf32> to vector<1x32xf32>
      %160 = vector.broadcast %159 : vector<1x32xf32> to vector<8x32xf32>
      %161 = arith.mulf %158, %160 : vector<8x32xf32>
      %162 = vector.shape_cast %3 : vector<32xf32> to vector<1x32xf32>
      %163 = vector.broadcast %162 : vector<1x32xf32> to vector<8x32xf32>
      %164 = arith.addf %161, %163 : vector<8x32xf32>
      %c0_84 = arith.constant 0 : index
      %c0_85 = arith.constant 0 : index
      %165 = vector.load %arg7[%c0_84, %c0_85] : memref<32x32xf32, #tpu.memory_space<vmem>>, vector<32x32xf32>
      %cst_86 = arith.constant dense<0.000000e+00> : vector<8x32xf32>
      %166 = tpu.matmul %164, %165, %cst_86 {dimension_numbers = #tpu.dot_dimension_numbers<[1], [0], [0], [1], [0, 0, 1, 1], [], []>} : vector<8x32xf32>, vector<32x32xf32>, vector<8x32xf32> -> vector<8x32xf32>
      %c0_87 = arith.constant 0 : index
      %c0_88 = arith.constant 0 : index
      %167 = vector.load %arg12[%c0_87, %c0_88] : memref<8x32xf32, #tpu.memory_space<vmem>>, vector<8x32xf32>
      tpu.vector_store %arg12[%c0_87, %c0_88], %166 {strides = array<i32>} : memref<8x32xf32, #tpu.memory_space<vmem>>, vector<8x32xf32>,
      %cst_89 = arith.constant 0xFF800000 : f32
      %168 = vector.broadcast %cst_89 : f32 to vector<8x4xf32>
      %c0_90 = arith.constant 0 : index
      %c0_91 = arith.constant 0 : index
      %169 = vector.load %arg13[%c0_90, %c0_91] : memref<8x4xf32, #tpu.memory_space<vmem>>, vector<8x4xf32>
      tpu.vector_store %arg13[%c0_90, %c0_91], %168 {strides = array<i32>} : memref<8x4xf32, #tpu.memory_space<vmem>>, vector<8x4xf32>,
      %cst_92 = arith.constant 0.000000e+00 : f32
      %170 = vector.broadcast %cst_92 : f32 to vector<8x4xf32>
      %c0_93 = arith.constant 0 : index
      %c0_94 = arith.constant 0 : index
      %171 = vector.load %arg14[%c0_93, %c0_94] : memref<8x4xf32, #tpu.memory_space<vmem>>, vector<8x4xf32>
      tpu.vector_store %arg14[%c0_93, %c0_94], %170 {strides = array<i32>} : memref<8x4xf32, #tpu.memory_space<vmem>>, vector<8x4xf32>,
      %cst_95 = arith.constant 0.000000e+00 : f32
      %172 = vector.broadcast %cst_95 : f32 to vector<8x32xf32>
      %c0_96 = arith.constant 0 : index
      %c0_97 = arith.constant 0 : index
      %173 = vector.load %arg15[%c0_96, %c0_97] : memref<8x32xf32, #tpu.memory_space<vmem>>, vector<8x32xf32>
      tpu.vector_store %arg15[%c0_96, %c0_97], %172 {strides = array<i32>} : memref<8x32xf32, #tpu.memory_space<vmem>>, vector<8x32xf32>,
    } else {
    }
    %c0_4 = arith.constant 0 : index
    %c0_5 = arith.constant 0 : index
    %c0_6 = arith.constant 0 : index
    %7 = vector.load %arg4[%c0_4, %c0_5, %c0_6] : memref<1x8x32xf32, #tpu.memory_space<vmem>>, vector<1x8x32xf32>
    %8 = vector.shape_cast %7 : vector<1x8x32xf32> to vector<8x32xf32>
    %cst = arith.constant dense<0.000000e+00> : vector<8xf32>
    %9 = vector.multi_reduction <add>, %8, %cst [1] : vector<8x32xf32> to vector<8xf32>
    %10 = vector.shape_cast %9 : vector<8xf32> to vector<8x1xf32>
    %cst_7 = arith.constant 3.200000e+01 : f32
    %11 = vector.broadcast %cst_7 : f32 to vector<8x1xf32>
    %12 = arith.divf %10, %11 : vector<8x1xf32>
    %13 = vector.broadcast %12 : vector<8x1xf32> to vector<8x32xf32>
    %14 = arith.subf %8, %13 : vector<8x32xf32>
    %15 = arith.mulf %14, %14 : vector<8x32xf32>
    %cst_8 = arith.constant dense<0.000000e+00> : vector<8xf32>
    %16 = vector.multi_reduction <add>, %15, %cst_8 [1] : vector<8x32xf32> to vector<8xf32>
    %17 = vector.shape_cast %16 : vector<8xf32> to vector<8x1xf32>
    %cst_9 = arith.constant 3.200000e+01 : f32
    %18 = vector.broadcast %cst_9 : f32 to vector<8x1xf32>
    %19 = arith.divf %17, %18 : vector<8x1xf32>
    %cst_10 = arith.constant 9.99999974E-6 : f32
    %20 = vector.broadcast %cst_10 : f32 to vector<8x1xf32>
    %21 = arith.addf %19, %20 : vector<8x1xf32>
    %22 = math.rsqrt %21 : vector<8x1xf32>
    %23 = vector.broadcast %22 : vector<8x1xf32> to vector<8x32xf32>
    %24 = arith.mulf %14, %23 : vector<8x32xf32>
    %25 = vector.shape_cast %1 : vector<32xf32> to vector<1x32xf32>
    %26 = vector.broadcast %25 : vector<1x32xf32> to vector<8x32xf32>
    %27 = arith.mulf %24, %26 : vector<8x32xf32>
    %28 = vector.shape_cast %3 : vector<32xf32> to vector<1x32xf32>
    %29 = vector.broadcast %28 : vector<1x32xf32> to vector<8x32xf32>
    %30 = arith.addf %27, %29 : vector<8x32xf32>
    %c0_11 = arith.constant 0 : index
    %c0_12 = arith.constant 0 : index
    %31 = vector.load %arg8[%c0_11, %c0_12] : memref<32x64xf32, #tpu.memory_space<vmem>>, vector<32x64xf32>
    %cst_13 = arith.constant dense<0.000000e+00> : vector<8x64xf32>
    %32 = tpu.matmul %30, %31, %cst_13 {dimension_numbers = #tpu.dot_dimension_numbers<[1], [0], [0], [1], [0, 0, 1, 1], [], []>} : vector<8x32xf32>, vector<32x64xf32>, vector<8x64xf32> -> vector<8x64xf32>
    %c0_14 = arith.constant 0 : index
    %c0_15 = arith.constant 0 : index
    %33 = vector.load %arg12[%c0_14, %c0_15] : memref<8x32xf32, #tpu.memory_space<vmem>>, vector<8x32xf32>
    %34 = vector.extract_strided_slice %32 {offsets = [0, 0], sizes = [8, 8], strides = [1, 1]} : vector<8x64xf32> to vector<8x8xf32>
    %35 = vector.extract_strided_slice %32 {offsets = [0, 32], sizes = [8, 8], strides = [1, 1]} : vector<8x64xf32> to vector<8x8xf32>
    %36 = vector.extract_strided_slice %33 {offsets = [0, 0], sizes = [8, 8], strides = [1, 1]} : vector<8x32xf32> to vector<8x8xf32>
    %cst_16 = arith.constant dense<0.000000e+00> : vector<8x8xf32>
    %37 = tpu.matmul %36, %34, %cst_16 {dimension_numbers = #tpu.dot_dimension_numbers<[1], [1], [0], [0], [0, 0, 1, 0], [], []>} : vector<8x8xf32>, vector<8x8xf32>, vector<8x8xf32> -> vector<8x8xf32>
    %c0_17 = arith.constant 0 : index
    %c0_18 = arith.constant 0 : index
    %38 = vector.load %arg13[%c0_17, %c0_18] : memref<8x4xf32, #tpu.memory_space<vmem>>, vector<8x1xf32>
    %cst_19 = arith.constant dense<0xFF800000> : vector<8xf32>
    %39 = vector.multi_reduction <maximumf>, %37, %cst_19 [1] : vector<8x8xf32> to vector<8xf32>
    %40 = vector.shape_cast %39 : vector<8xf32> to vector<8x1xf32>
    %41 = arith.maximumf %38, %40 : vector<8x1xf32>
    %42 = arith.subf %38, %41 : vector<8x1xf32>
    %43 = math.exp %42 : vector<8x1xf32>
    %44 = vector.broadcast %41 : vector<8x1xf32> to vector<8x8xf32>
    %45 = arith.subf %37, %44 : vector<8x8xf32>
    %46 = math.exp %45 : vector<8x8xf32>
    %c0_20 = arith.constant 0 : index
    %c0_21 = arith.constant 0 : index
    %47 = vector.load %arg14[%c0_20, %c0_21] : memref<8x4xf32, #tpu.memory_space<vmem>>, vector<8x1xf32>
    %48 = arith.mulf %43, %47 : vector<8x1xf32>
    %cst_22 = arith.constant dense<0.000000e+00> : vector<8xf32>
    %49 = vector.multi_reduction <add>, %46, %cst_22 [1] : vector<8x8xf32> to vector<8xf32>
    %50 = vector.shape_cast %49 : vector<8xf32> to vector<8x1xf32>
    %51 = arith.addf %48, %50 : vector<8x1xf32>
    %c0_23 = arith.constant 0 : index
    %c0_24 = arith.constant 0 : index
    %52 = vector.load %arg14[%c0_23, %c0_24] : memref<8x4xf32, #tpu.memory_space<vmem>>, vector<8x1xf32>
    tpu.vector_store %arg14[%c0_23, %c0_24], %51 {strides = array<i32>} : memref<8x4xf32, #tpu.memory_space<vmem>>, vector<8x1xf32>,
    %c0_25 = arith.constant 0 : index
    %c0_26 = arith.constant 0 : index
    %53 = vector.load %arg15[%c0_25, %c0_26] : memref<8x32xf32, #tpu.memory_space<vmem>>, vector<8x8xf32>
    %54 = vector.broadcast %43 : vector<8x1xf32> to vector<8x8xf32>
    %55 = arith.mulf %54, %53 : vector<8x8xf32>
    %cst_27 = arith.constant dense<0.000000e+00> : vector<8x8xf32>
    %56 = tpu.matmul %46, %35, %cst_27 {dimension_numbers = #tpu.dot_dimension_numbers<[1], [0], [0], [1], [0, 0, 1, 1], [], []>} : vector<8x8xf32>, vector<8x8xf32>, vector<8x8xf32> -> vector<8x8xf32>
    %57 = arith.addf %55, %56 : vector<8x8xf32>
    %c0_28 = arith.constant 0 : index
    %c0_29 = arith.constant 0 : index
    %58 = vector.load %arg15[%c0_28, %c0_29] : memref<8x32xf32, #tpu.memory_space<vmem>>, vector<8x8xf32>
    tpu.vector_store %arg15[%c0_28, %c0_29], %57 {strides = array<i32>} : memref<8x32xf32, #tpu.memory_space<vmem>>, vector<8x8xf32>,
    %c0_30 = arith.constant 0 : index
    %c0_31 = arith.constant 0 : index
    %59 = vector.load %arg13[%c0_30, %c0_31] : memref<8x4xf32, #tpu.memory_space<vmem>>, vector<8x1xf32>
    tpu.vector_store %arg13[%c0_30, %c0_31], %41 {strides = array<i32>} : memref<8x4xf32, #tpu.memory_space<vmem>>, vector<8x1xf32>,
    %60 = vector.extract_strided_slice %32 {offsets = [0, 8], sizes = [8, 8], strides = [1, 1]} : vector<8x64xf32> to vector<8x8xf32>
    %61 = vector.extract_strided_slice %32 {offsets = [0, 40], sizes = [8, 8], strides = [1, 1]} : vector<8x64xf32> to vector<8x8xf32>
    %62 = vector.extract_strided_slice %33 {offsets = [0, 8], sizes = [8, 8], strides = [1, 1]} : vector<8x32xf32> to vector<8x8xf32>
    %cst_32 = arith.constant dense<0.000000e+00> : vector<8x8xf32>
    %63 = tpu.matmul %62, %60, %cst_32 {dimension_numbers = #tpu.dot_dimension_numbers<[1], [1], [0], [0], [0, 0, 1, 0], [], []>} : vector<8x8xf32>, vector<8x8xf32>, vector<8x8xf32> -> vector<8x8xf32>
    %c0_33 = arith.constant 0 : index
    %c1 = arith.constant 1 : index
    %64 = vector.load %arg13[%c0_33, %c1] : memref<8x4xf32, #tpu.memory_space<vmem>>, vector<8x1xf32>
    %cst_34 = arith.constant dense<0xFF800000> : vector<8xf32>
    %65 = vector.multi_reduction <maximumf>, %63, %cst_34 [1] : vector<8x8xf32> to vector<8xf32>
    %66 = vector.shape_cast %65 : vector<8xf32> to vector<8x1xf32>
    %67 = arith.maximumf %64, %66 : vector<8x1xf32>
    %68 = arith.subf %64, %67 : vector<8x1xf32>
    %69 = math.exp %68 : vector<8x1xf32>
    %70 = vector.broadcast %67 : vector<8x1xf32> to vector<8x8xf32>
    %71 = arith.subf %63, %70 : vector<8x8xf32>
    %72 = math.exp %71 : vector<8x8xf32>
    %c0_35 = arith.constant 0 : index
    %c1_36 = arith.constant 1 : index
    %73 = vector.load %arg14[%c0_35, %c1_36] : memref<8x4xf32, #tpu.memory_space<vmem>>, vector<8x1xf32>
    %74 = arith.mulf %69, %73 : vector<8x1xf32>
    %cst_37 = arith.constant dense<0.000000e+00> : vector<8xf32>
    %75 = vector.multi_reduction <add>, %72, %cst_37 [1] : vector<8x8xf32> to vector<8xf32>
    %76 = vector.shape_cast %75 : vector<8xf32> to vector<8x1xf32>
    %77 = arith.addf %74, %76 : vector<8x1xf32>
    %c0_38 = arith.constant 0 : index
    %c1_39 = arith.constant 1 : index
    %78 = vector.load %arg14[%c0_38, %c1_39] : memref<8x4xf32, #tpu.memory_space<vmem>>, vector<8x1xf32>
    tpu.vector_store %arg14[%c0_38, %c1_39], %77 {strides = array<i32>} : memref<8x4xf32, #tpu.memory_space<vmem>>, vector<8x1xf32>,
    %c0_40 = arith.constant 0 : index
    %c8 = arith.constant 8 : index
    %79 = vector.load %arg15[%c0_40, %c8] : memref<8x32xf32, #tpu.memory_space<vmem>>, vector<8x8xf32>
    %80 = vector.broadcast %69 : vector<8x1xf32> to vector<8x8xf32>
    %81 = arith.mulf %80, %79 : vector<8x8xf32>
    %cst_41 = arith.constant dense<0.000000e+00> : vector<8x8xf32>
    %82 = tpu.matmul %72, %61, %cst_41 {dimension_numbers = #tpu.dot_dimension_numbers<[1], [0], [0], [1], [0, 0, 1, 1], [], []>} : vector<8x8xf32>, vector<8x8xf32>, vector<8x8xf32> -> vector<8x8xf32>
    %83 = arith.addf %81, %82 : vector<8x8xf32>
    %c0_42 = arith.constant 0 : index
    %c8_43 = arith.constant 8 : index
    %84 = vector.load %arg15[%c0_42, %c8_43] : memref<8x32xf32, #tpu.memory_space<vmem>>, vector<8x8xf32>
    tpu.vector_store %arg15[%c0_42, %c8_43], %83 {strides = array<i32>} : memref<8x32xf32, #tpu.memory_space<vmem>>, vector<8x8xf32>,
    %c0_44 = arith.constant 0 : index
    %c1_45 = arith.constant 1 : index
    %85 = vector.load %arg13[%c0_44, %c1_45] : memref<8x4xf32, #tpu.memory_space<vmem>>, vector<8x1xf32>
    tpu.vector_store %arg13[%c0_44, %c1_45], %67 {strides = array<i32>} : memref<8x4xf32, #tpu.memory_space<vmem>>, vector<8x1xf32>,
    %86 = vector.extract_strided_slice %32 {offsets = [0, 16], sizes = [8, 8], strides = [1, 1]} : vector<8x64xf32> to vector<8x8xf32>
    %87 = vector.extract_strided_slice %32 {offsets = [0, 48], sizes = [8, 8], strides = [1, 1]} : vector<8x64xf32> to vector<8x8xf32>
    %88 = vector.extract_strided_slice %33 {offsets = [0, 16], sizes = [8, 8], strides = [1, 1]} : vector<8x32xf32> to vector<8x8xf32>
    %cst_46 = arith.constant dense<0.000000e+00> : vector<8x8xf32>
    %89 = tpu.matmul %88, %86, %cst_46 {dimension_numbers = #tpu.dot_dimension_numbers<[1], [1], [0], [0], [0, 0, 1, 0], [], []>} : vector<8x8xf32>, vector<8x8xf32>, vector<8x8xf32> -> vector<8x8xf32>
    %c0_47 = arith.constant 0 : index
    %c2 = arith.constant 2 : index
    %90 = vector.load %arg13[%c0_47, %c2] : memref<8x4xf32, #tpu.memory_space<vmem>>, vector<8x1xf32>
    %cst_48 = arith.constant dense<0xFF800000> : vector<8xf32>
    %91 = vector.multi_reduction <maximumf>, %89, %cst_48 [1] : vector<8x8xf32> to vector<8xf32>
    %92 = vector.shape_cast %91 : vector<8xf32> to vector<8x1xf32>
    %93 = arith.maximumf %90, %92 : vector<8x1xf32>
    %94 = arith.subf %90, %93 : vector<8x1xf32>
    %95 = math.exp %94 : vector<8x1xf32>
    %96 = vector.broadcast %93 : vector<8x1xf32> to vector<8x8xf32>
    %97 = arith.subf %89, %96 : vector<8x8xf32>
    %98 = math.exp %97 : vector<8x8xf32>
    %c0_49 = arith.constant 0 : index
    %c2_50 = arith.constant 2 : index
    %99 = vector.load %arg14[%c0_49, %c2_50] : memref<8x4xf32, #tpu.memory_space<vmem>>, vector<8x1xf32>
    %100 = arith.mulf %95, %99 : vector<8x1xf32>
    %cst_51 = arith.constant dense<0.000000e+00> : vector<8xf32>
    %101 = vector.multi_reduction <add>, %98, %cst_51 [1] : vector<8x8xf32> to vector<8xf32>
    %102 = vector.shape_cast %101 : vector<8xf32> to vector<8x1xf32>
    %103 = arith.addf %100, %102 : vector<8x1xf32>
    %c0_52 = arith.constant 0 : index
    %c2_53 = arith.constant 2 : index
    %104 = vector.load %arg14[%c0_52, %c2_53] : memref<8x4xf32, #tpu.memory_space<vmem>>, vector<8x1xf32>
    tpu.vector_store %arg14[%c0_52, %c2_53], %103 {strides = array<i32>} : memref<8x4xf32, #tpu.memory_space<vmem>>, vector<8x1xf32>,
    %c0_54 = arith.constant 0 : index
    %c16 = arith.constant 16 : index
    %105 = vector.load %arg15[%c0_54, %c16] : memref<8x32xf32, #tpu.memory_space<vmem>>, vector<8x8xf32>
    %106 = vector.broadcast %95 : vector<8x1xf32> to vector<8x8xf32>
    %107 = arith.mulf %106, %105 : vector<8x8xf32>
    %cst_55 = arith.constant dense<0.000000e+00> : vector<8x8xf32>
    %108 = tpu.matmul %98, %87, %cst_55 {dimension_numbers = #tpu.dot_dimension_numbers<[1], [0], [0], [1], [0, 0, 1, 1], [], []>} : vector<8x8xf32>, vector<8x8xf32>, vector<8x8xf32> -> vector<8x8xf32>
    %109 = arith.addf %107, %108 : vector<8x8xf32>
    %c0_56 = arith.constant 0 : index
    %c16_57 = arith.constant 16 : index
    %110 = vector.load %arg15[%c0_56, %c16_57] : memref<8x32xf32, #tpu.memory_space<vmem>>, vector<8x8xf32>
    tpu.vector_store %arg15[%c0_56, %c16_57], %109 {strides = array<i32>} : memref<8x32xf32, #tpu.memory_space<vmem>>, vector<8x8xf32>,
    %c0_58 = arith.constant 0 : index
    %c2_59 = arith.constant 2 : index
    %111 = vector.load %arg13[%c0_58, %c2_59] : memref<8x4xf32, #tpu.memory_space<vmem>>, vector<8x1xf32>
    tpu.vector_store %arg13[%c0_58, %c2_59], %93 {strides = array<i32>} : memref<8x4xf32, #tpu.memory_space<vmem>>, vector<8x1xf32>,
    %112 = vector.extract_strided_slice %32 {offsets = [0, 24], sizes = [8, 8], strides = [1, 1]} : vector<8x64xf32> to vector<8x8xf32>
    %113 = vector.extract_strided_slice %32 {offsets = [0, 56], sizes = [8, 8], strides = [1, 1]} : vector<8x64xf32> to vector<8x8xf32>
    %114 = vector.extract_strided_slice %33 {offsets = [0, 24], sizes = [8, 8], strides = [1, 1]} : vector<8x32xf32> to vector<8x8xf32>
    %cst_60 = arith.constant dense<0.000000e+00> : vector<8x8xf32>
    %115 = tpu.matmul %114, %112, %cst_60 {dimension_numbers = #tpu.dot_dimension_numbers<[1], [1], [0], [0], [0, 0, 1, 0], [], []>} : vector<8x8xf32>, vector<8x8xf32>, vector<8x8xf32> -> vector<8x8xf32>
    %c0_61 = arith.constant 0 : index
    %c3 = arith.constant 3 : index
    %116 = vector.load %arg13[%c0_61, %c3] : memref<8x4xf32, #tpu.memory_space<vmem>>, vector<8x1xf32>
    %cst_62 = arith.constant dense<0xFF800000> : vector<8xf32>
    %117 = vector.multi_reduction <maximumf>, %115, %cst_62 [1] : vector<8x8xf32> to vector<8xf32>
    %118 = vector.shape_cast %117 : vector<8xf32> to vector<8x1xf32>
    %119 = arith.maximumf %116, %118 : vector<8x1xf32>
    %120 = arith.subf %116, %119 : vector<8x1xf32>
    %121 = math.exp %120 : vector<8x1xf32>
    %122 = vector.broadcast %119 : vector<8x1xf32> to vector<8x8xf32>
    %123 = arith.subf %115, %122 : vector<8x8xf32>
    %124 = math.exp %123 : vector<8x8xf32>
    %c0_63 = arith.constant 0 : index
    %c3_64 = arith.constant 3 : index
    %125 = vector.load %arg14[%c0_63, %c3_64] : memref<8x4xf32, #tpu.memory_space<vmem>>, vector<8x1xf32>
    %126 = arith.mulf %121, %125 : vector<8x1xf32>
    %cst_65 = arith.constant dense<0.000000e+00> : vector<8xf32>
    %127 = vector.multi_reduction <add>, %124, %cst_65 [1] : vector<8x8xf32> to vector<8xf32>
    %128 = vector.shape_cast %127 : vector<8xf32> to vector<8x1xf32>
    %129 = arith.addf %126, %128 : vector<8x1xf32>
    %c0_66 = arith.constant 0 : index
    %c3_67 = arith.constant 3 : index
    %130 = vector.load %arg14[%c0_66, %c3_67] : memref<8x4xf32, #tpu.memory_space<vmem>>, vector<8x1xf32>
    tpu.vector_store %arg14[%c0_66, %c3_67], %129 {strides = array<i32>} : memref<8x4xf32, #tpu.memory_space<vmem>>, vector<8x1xf32>,
    %c0_68 = arith.constant 0 : index
    %c24 = arith.constant 24 : index
    %131 = vector.load %arg15[%c0_68, %c24] : memref<8x32xf32, #tpu.memory_space<vmem>>, vector<8x8xf32>
    %132 = vector.broadcast %121 : vector<8x1xf32> to vector<8x8xf32>
    %133 = arith.mulf %132, %131 : vector<8x8xf32>
    %cst_69 = arith.constant dense<0.000000e+00> : vector<8x8xf32>
    %134 = tpu.matmul %124, %113, %cst_69 {dimension_numbers = #tpu.dot_dimension_numbers<[1], [0], [0], [1], [0, 0, 1, 1], [], []>} : vector<8x8xf32>, vector<8x8xf32>, vector<8x8xf32> -> vector<8x8xf32>
    %135 = arith.addf %133, %134 : vector<8x8xf32>
    %c0_70 = arith.constant 0 : index
    %c24_71 = arith.constant 24 : index
    %136 = vector.load %arg15[%c0_70, %c24_71] : memref<8x32xf32, #tpu.memory_space<vmem>>, vector<8x8xf32>
    tpu.vector_store %arg15[%c0_70, %c24_71], %135 {strides = array<i32>} : memref<8x32xf32, #tpu.memory_space<vmem>>, vector<8x8xf32>,
    %c0_72 = arith.constant 0 : index
    %c3_73 = arith.constant 3 : index
    %137 = vector.load %arg13[%c0_72, %c3_73] : memref<8x4xf32, #tpu.memory_space<vmem>>, vector<8x1xf32>
    tpu.vector_store %arg13[%c0_72, %c3_73], %119 {strides = array<i32>} : memref<8x4xf32, #tpu.memory_space<vmem>>, vector<8x1xf32>,
    %c0_i32_74 = arith.constant 0 : i32
    %138 = arith.cmpi eq, %arg2, %c0_i32_74 : i32
    %139 = arith.extui %138 : i1 to i32
    %c0_i32_75 = arith.constant 0 : i32
    %140 = arith.cmpi ne, %139, %c0_i32_75 : i32
    scf.if %140 {
      %c0_76 = arith.constant 0 : index
      %c0_77 = arith.constant 0 : index
      %141 = vector.load %arg14[%c0_76, %c0_77] : memref<8x4xf32, #tpu.memory_space<vmem>>, vector<8x4xf32>
      %142 = tpu.reciprocal %141 {approx = true} : vector<8x4xf32> -> vector<8x4xf32>
      %c0_78 = arith.constant 0 : index
      %c0_79 = arith.constant 0 : index
      %143 = vector.load %arg15[%c0_78, %c0_79] : memref<8x32xf32, #tpu.memory_space<vmem>>, vector<8x8xf32>
      %144 = vector.extract_strided_slice %142 {offsets = [0, 0], sizes = [8, 1], strides = [1, 1]} : vector<8x4xf32> to vector<8x1xf32>
      %145 = vector.broadcast %144 : vector<8x1xf32> to vector<8x8xf32>
      %146 = arith.mulf %143, %145 : vector<8x8xf32>
      %c0_80 = arith.constant 0 : index
      %c0_81 = arith.constant 0 : index
      %147 = vector.load %arg15[%c0_80, %c0_81] : memref<8x32xf32, #tpu.memory_space<vmem>>, vector<8x8xf32>
      tpu.vector_store %arg15[%c0_80, %c0_81], %146 {strides = array<i32>} : memref<8x32xf32, #tpu.memory_space<vmem>>, vector<8x8xf32>,
      %c0_82 = arith.constant 0 : index
      %c8_83 = arith.constant 8 : index
      %148 = vector.load %arg15[%c0_82, %c8_83] : memref<8x32xf32, #tpu.memory_space<vmem>>, vector<8x8xf32>
      %149 = vector.extract_strided_slice %142 {offsets = [0, 1], sizes = [8, 1], strides = [1, 1]} : vector<8x4xf32> to vector<8x1xf32>
      %150 = vector.broadcast %149 : vector<8x1xf32> to vector<8x8xf32>
      %151 = arith.mulf %148, %150 : vector<8x8xf32>
      %c0_84 = arith.constant 0 : index
      %c8_85 = arith.constant 8 : index
      %152 = vector.load %arg15[%c0_84, %c8_85] : memref<8x32xf32, #tpu.memory_space<vmem>>, vector<8x8xf32>
      tpu.vector_store %arg15[%c0_84, %c8_85], %151 {strides = array<i32>} : memref<8x32xf32, #tpu.memory_space<vmem>>, vector<8x8xf32>,
      %c0_86 = arith.constant 0 : index
      %c16_87 = arith.constant 16 : index
      %153 = vector.load %arg15[%c0_86, %c16_87] : memref<8x32xf32, #tpu.memory_space<vmem>>, vector<8x8xf32>
      %154 = vector.extract_strided_slice %142 {offsets = [0, 2], sizes = [8, 1], strides = [1, 1]} : vector<8x4xf32> to vector<8x1xf32>
      %155 = vector.broadcast %154 : vector<8x1xf32> to vector<8x8xf32>
      %156 = arith.mulf %153, %155 : vector<8x8xf32>
      %c0_88 = arith.constant 0 : index
      %c16_89 = arith.constant 16 : index
      %157 = vector.load %arg15[%c0_88, %c16_89] : memref<8x32xf32, #tpu.memory_space<vmem>>, vector<8x8xf32>
      tpu.vector_store %arg15[%c0_88, %c16_89], %156 {strides = array<i32>} : memref<8x32xf32, #tpu.memory_space<vmem>>, vector<8x8xf32>,
      %c0_90 = arith.constant 0 : index
      %c24_91 = arith.constant 24 : index
      %158 = vector.load %arg15[%c0_90, %c24_91] : memref<8x32xf32, #tpu.memory_space<vmem>>, vector<8x8xf32>
      %159 = vector.extract_strided_slice %142 {offsets = [0, 3], sizes = [8, 1], strides = [1, 1]} : vector<8x4xf32> to vector<8x1xf32>
      %160 = vector.broadcast %159 : vector<8x1xf32> to vector<8x8xf32>
      %161 = arith.mulf %158, %160 : vector<8x8xf32>
      %c0_92 = arith.constant 0 : index
      %c24_93 = arith.constant 24 : index
      %162 = vector.load %arg15[%c0_92, %c24_93] : memref<8x32xf32, #tpu.memory_space<vmem>>, vector<8x8xf32>
      tpu.vector_store %arg15[%c0_92, %c24_93], %161 {strides = array<i32>} : memref<8x32xf32, #tpu.memory_space<vmem>>, vector<8x8xf32>,
      %c0_94 = arith.constant 0 : index
      %c0_95 = arith.constant 0 : index
      %163 = vector.load %arg15[%c0_94, %c0_95] : memref<8x32xf32, #tpu.memory_space<vmem>>, vector<8x32xf32>
      %c0_96 = arith.constant 0 : index
      %c0_97 = arith.constant 0 : index
      %164 = vector.load %arg9[%c0_96, %c0_97] : memref<32x32xf32, #tpu.memory_space<vmem>>, vector<32x32xf32>
      %cst_98 = arith.constant dense<0.000000e+00> : vector<8x32xf32>
      %165 = tpu.matmul %163, %164, %cst_98 {dimension_numbers = #tpu.dot_dimension_numbers<[1], [0], [0], [1], [0, 0, 1, 1], [], []>} : vector<8x32xf32>, vector<32x32xf32>, vector<8x32xf32> -> vector<8x32xf32>
      %c0_99 = arith.constant 0 : index
      %c0_100 = arith.constant 0 : index
      %166 = vector.load %arg10[%c0_99, %c0_100] : memref<1x32xf32, #tpu.memory_space<vmem>>, vector<1x32xf32>
      %167 = vector.shape_cast %166 : vector<1x32xf32> to vector<32xf32>
      %168 = vector.shape_cast %167 : vector<32xf32> to vector<1x32xf32>
      %169 = vector.broadcast %168 : vector<1x32xf32> to vector<8x32xf32>
      %170 = arith.addf %165, %169 : vector<8x32xf32>
      %c0_101 = arith.constant 0 : index
      %c0_102 = arith.constant 0 : index
      %c0_103 = arith.constant 0 : index
      %171 = vector.load %arg11[%c0_101, %c0_102, %c0_103] : memref<1x8x32xf32, #tpu.memory_space<vmem>>, vector<1x8x32xf32>
      %172 = vector.shape_cast %171 : vector<1x8x32xf32> to vector<8x32xf32>
      %173 = vector.shape_cast %170 : vector<8x32xf32> to vector<1x8x32xf32>
      tpu.vector_store %arg11[%c0_101, %c0_102, %c0_103], %173 {strides = array<i32>} : memref<1x8x32xf32, #tpu.memory_space<vmem>>, vector<1x8x32xf32>,
    } else {
    }
    return
  }
  func.func @transform_0(%arg0: i32, %arg1: i32, %arg2: i32) -> (i32, i32, i32) {
    %c0_i32 = arith.constant 0 : i32
    %c0_i32_0 = arith.constant 0 : i32
    return %arg0, %arg1, %c0_i32 : i32, i32, i32
  }
  func.func @transform_1(%arg0: i32, %arg1: i32, %arg2: i32) -> (i32, i32, i32) {
    %c0_i32 = arith.constant 0 : i32
    %c0_i32_0 = arith.constant 0 : i32
    return %arg0, %arg2, %c0_i32 : i32, i32, i32
  }
  func.func @transform_2(%arg0: i32, %arg1: i32, %arg2: i32) -> (i32, i32) {
    %c0_i32 = arith.constant 0 : i32
    %c0_i32_0 = arith.constant 0 : i32
    %c0_i32_1 = arith.constant 0 : i32
    return %c0_i32, %c0_i32_0 : i32, i32
  }
  func.func @transform_3(%arg0: i32, %arg1: i32, %arg2: i32) -> (i32, i32) {
    %c0_i32 = arith.constant 0 : i32
    %c0_i32_0 = arith.constant 0 : i32
    %c0_i32_1 = arith.constant 0 : i32
    return %c0_i32, %c0_i32_0 : i32, i32
  }
  func.func @transform_4(%arg0: i32, %arg1: i32, %arg2: i32) -> (i32, i32) {
    %c0_i32 = arith.constant 0 : i32
    %c0_i32_0 = arith.constant 0 : i32
    %c0_i32_1 = arith.constant 0 : i32
    return %c0_i32, %c0_i32_0 : i32, i32
  }
  func.func @transform_5(%arg0: i32, %arg1: i32, %arg2: i32) -> (i32, i32) {
    %c0_i32 = arith.constant 0 : i32
    %c0_i32_0 = arith.constant 0 : i32
    %c0_i32_1 = arith.constant 0 : i32
    return %c0_i32, %c0_i32_0 : i32, i32
  }
  func.func @transform_6(%arg0: i32, %arg1: i32, %arg2: i32) -> (i32, i32) {
    %c0_i32 = arith.constant 0 : i32
    %c0_i32_0 = arith.constant 0 : i32
    %c0_i32_1 = arith.constant 0 : i32
    return %c0_i32, %c0_i32_0 : i32, i32
  }
  func.func @transform_7(%arg0: i32, %arg1: i32, %arg2: i32) -> (i32, i32) {
    %c0_i32 = arith.constant 0 : i32
    %c0_i32_0 = arith.constant 0 : i32
    %c0_i32_1 = arith.constant 0 : i32
    return %c0_i32, %c0_i32_0 : i32, i32
  }
  func.func @transform_8(%arg0: i32, %arg1: i32, %arg2: i32) -> (i32, i32, i32) {
    %c0_i32 = arith.constant 0 : i32
    %c0_i32_0 = arith.constant 0 : i32
    return %arg0, %arg1, %c0_i32 : i32, i32, i32
  }
}

</mosaic_0001>

<bundles_post_ra>
// kernel: tpu_custom_call.1
= control target key start
LH: loop header
LB: loop body
LE: loop exit
PB: predicated region body
PF: predicated region fallthrough
CT: control target
= control target key end

     0   :  { %s2681_s0 = inlined_call_operand.hbm [shape: f32[2,8,32], index: 0, kind: input, shape index: {}]   ;;  %s2682_s1 = inlined_call_operand.hbm [shape: f32[2,8,32], index: 1, kind: input, shape index: {}]   ;;  %s2683_s2 = inlined_call_operand.vmem [shape: f32[1,32], index: 2, kind: input, shape index: {}]   ;;  %s2684_s3 = inlined_call_operand.vmem [shape: f32[1,32], index: 3, kind: input, shape index: {}]   ;;  %s2685_s4 = inlined_call_operand.hbm [shape: f32[32,32], index: 4, kind: input, shape index: {}]   ;;  %s2686_s5 = inlined_call_operand.hbm [shape: f32[32,64], index: 5, kind: input, shape index: {}]   ;;  %s2687_s6 = inlined_call_operand.hbm [shape: f32[32,32], index: 6, kind: input, shape index: {}]   ;;  %s2688_s7 = inlined_call_operand.vmem [shape: f32[1,32], index: 7, kind: input, shape index: {}]   ;;  %s2689_s8 = inlined_call_operand.hbm [shape: f32[2,8,32], index: 8, kind: output, shape index: {}]  }
   0x1   :  { %2694 = sst [smem:[#allocation23_spill]] %s2681_s0 }
   0x2   :  { %2695 = sst [smem:[#allocation24_spill]] %s2685_s4 }
   0x3   :  { %2696 = sst [smem:[#allocation25_spill]] %s2686_s5 }
   0x4   :  { %2697 = sst [smem:[#allocation26_spill]] %s2687_s6 }
   0x5   :  { %13 = vsyncpa [#allocation7], 0 }
   0x6   :  { %15 = vsyncpa [#allocation7 + $0x1], 0 }
   0x7   :  { %16 = vsyncpa [#allocation10], 0 }
   0x8   :  { %18 = vsyncpa [#allocation10 + $0x1], 0 }
   0x9   :  { %19 = vsyncpa [#allocation13], 0 }
   0xa   :  { %20 = vsyncpa [#allocation8], 0 }
   0xb   :  { %22 = vsyncpa [#allocation8 + $0x1], 0  ;;  %s2283_s27 = smov 0   ;;  %s2285_s28 = smov 0  }
   0xc   :  { %s2287_s29 = smov 0   ;;  %s2289_s30 = smov 0  }
   0xd   :  { %s2291_s9 = smov 0   ;;  %s2293_s10 = smov 0  }
   0xe LB: > { %s2314_s11 = sadd.s32 4294967295, %s2211_s10   ;;  %s1691_s12 = sadd.s32 4294967294, %s2211_s10   ;;  %s2211_s10 = sphi %s2293_s10, %s28_s10   ;;  %s2207_s9 = sphi %s2291_s9, %s2724_s9   ;;  %s2203_s30 = sphi %s2289_s30, %s2723_s30   ;;  %s2199_s29 = sphi %s2287_s29, %s2722_s29   ;;  %s2195_s28 = sphi %s2285_s28, %s2721_s28   ;;  %s2191_s27 = sphi %s2283_s27, %s2720_s27  }
   0xf   : > { %p69_p0 = scmp.ne.s32.totalorder %s2195_s28, %s2191_s27  ;;  %p2690_p1 = scmp.eq.s32.totalorder %s2314_s11, 0 }
  0x10   : > { %p255_p3 = scmp.eq.s32.totalorder %s1691_s12, 1  ;;  %p1692_p5 = scmp.ge.s32.totalorder %s2211_s10, 1 }
  0x11   : > { %p2323_p4 = por %p2690_p1, %p69_p0  ;;  %p262_p7 = scmp.lt.s32.totalorder %s2211_s10, 3 }
  0x12   : > { %p2328_p6 = por %p255_p3, %p69_p0  ;;  %s2213_s16 = smov [#allocation11]  }
  0x13   : > { %s2698_s13 = scalar_select %p2323_p4, 1, 0 }
  0x14   : > { %s2699_s14 = scalar_select %p2328_p6, 1, 0 }
  0x15   : > { %p2333_p8 = pnand %p1692_p5, %p262_p7  ;;  %s280_s17 = sshll.u32 %s2213_s16, 4  ;;  %s281_s17 = int_to_ptr.vmem [resolvable:$true] %s280_s17 }
  0x16   : > { %2700 = sst [smem:[#allocation21_spill]] %s2699_s14  ;;  %s2214_s19 = smov [#allocation12]  }
  0x17   : > { %p1852_p9 = pneg %p2333_p8  ;;  %s293_s20 = sshll.u32 %s2214_s19, 4  ;;  %s294_s20 = int_to_ptr.vmem [resolvable:$true] %s293_s20 }
  0x18   : > { %s2215_s21 = smov [#allocation14]   ;;  %s1996_s23 = scalar_lea.vmem %s281_s17, 512 }
  0x19   : > { %p2342_p11 = pnand %p1852_p9, %p2690_p1  ;;  %s306_s22 = sshll.u32 %s2215_s21, 4  ;;  %s307_s22 = int_to_ptr.vmem [resolvable:$true] %s306_s22 }
  0x1a   : > { %p1997_p13 = scmp.ne.s32.totalorder %s281_s17, %s1996_s23  ;;  %p2004_p5 = scmp.lt.s32.totalorder %s281_s17, %s281_s17 }
  0x1b   : > { %p1987_p12 = pneg %p2342_p11  ;;  %p2005_p7 = scmp.lt.s32.totalorder %s1996_s23, %s1996_s23 }
  0x1d   : > { %p1999_p0 = pnand %p1997_p13, %p1987_p12  ;;  %p2006_p9 = por %p2005_p7, %p2004_p5 }
  0x1f   : > { %p2000_p3 = pneg %p1999_p0 }
  0x21   : > { %p2007_p10 = pnand %p2006_p9, %p2000_p3 }
  0x23   : > { %2010 = shalt.err (!%p2007_p10)
}
  0x24   : > { %s2216_s24 = smov 128   ;;  %s2217_s25 = smov 8  }
  0x25   : > { %s2703_s4 = sld [smem:[#allocation24_spill]]  ;;  %s2022_s16 = scalar_lea.vmem %s294_s20, 512 }
  0x26   : > { %p2023_p1 = scmp.ne.s32.totalorder %s294_s20, %s2022_s16  ;;  %p2030_p2 = scmp.lt.s32.totalorder %s294_s20, %s294_s20 }
  0x27   : > { %p2031_p6 = scmp.lt.s32.totalorder %s2022_s16, %s2022_s16 }
  0x28   : > { %p2025_p13 = pnand %p2023_p1, %p1987_p12 }
  0x29   : > { %p2032_p5 = por %p2031_p6, %p2030_p2 }
  0x2a   : > { %p2026_p0 = pneg %p2025_p13 }
  0x2b   : > { %1855 = dma.hbm_to_vmem [thread:$0]  (!%p2342_p11), %s2703_s4, 512, %s281_s17, [#allocation10], %s2216_s24, %s2216_s24, %s2217_s25  }
  0x2c   : > { %p2033_p3 = pnand %p2032_p5, %p2026_p0 }
  0x2e   : > { %2036 = shalt.err (!%p2033_p3)
}
  0x2f   : > { %s2704_s5 = sld [smem:[#allocation25_spill]]  ;;  %s2048_s17 = scalar_lea.vmem %s307_s22, 512 }
  0x30   : > { %p2049_p10 = scmp.ne.s32.totalorder %s307_s22, %s2048_s17  ;;  %p2056_p9 = scmp.lt.s32.totalorder %s307_s22, %s307_s22 }
  0x31   : > { %p2057_p13 = scmp.lt.s32.totalorder %s2048_s17, %s2048_s17 }
  0x32   : > { %p2051_p7 = pnand %p2049_p10, %p1987_p12 }
  0x33   : > { %p2058_p4 = por %p2057_p13, %p2056_p9 }
  0x34   : > { %p2052_p1 = pneg %p2051_p7 }
  0x35   : > { %1858 = dma.hbm_to_vmem [thread:$0]  (!%p2342_p11), %s2704_s5, 512, %s294_s20, [#allocation13], %s2216_s24, %s2216_s24, %s2217_s25  }
  0x36   : > { %p2059_p2 = pnand %p2058_p4, %p2052_p1 }
  0x38   : > { %2062 = shalt.err (!%p2059_p2)
}
  0x39   : > { %s2705_s6 = sld [smem:[#allocation26_spill]]  ;;  %s56_s20 = sadd.s32 1, %s2199_s29 }
  0x3a   : > { %s47_s12 = sadd.s32 1, %s2207_s9  ;;  %p63_p4 = scmp.ne.s32.totalorder %s2199_s29, %s2195_s28 }
  0x3b   : > { %p49_p6 = scmp.ge.s32.totalorder %s47_s12, 2  ;;  %p64_p12 = scmp.eq.s32.totalorder %s2211_s10, 0 }
  0x3c   : > { %p2706_p0 = scmp.eq.s32.totalorder %s2314_s11, 1  ;;  %p1876_p3 = scmp.lt.s32.totalorder %s2211_s10, 2 }
  0x3d   : > { %s2726_s12 = smov (%p49_p6, %s47_s12), 0  ;;  %p65_p10 = por %p64_p12, %p63_p4 }
  0x3e   : > { %p2379_p5 = por %p2706_p0, %p63_p4  ;;  %2708 = sst [smem:[#allocation22_spill]] %s2726_s12 }
  0x3f   : > { %1861 = dma.hbm_to_vmem [thread:$0]  (!%p2342_p11), %s2705_s6, 512, %s307_s22, [#allocation13], %s2216_s24, %s2216_s24, %s2217_s25  }
  0x40   : > { %s323_s16 = sand.u32 1, %s2199_s29   ;;  %s51_s19 = ssub.s32 %s2207_s9, %s2726_s12 }
  0x41   : > { %p54_p11 = scmp.eq.s32.totalorder %s51_s19, 0  ;;  %s1697_s22 = sshll.u32 %s323_s16, 3 }
  0x42   : > { %s1698_s24 = sshll.u32 %s2207_s9, 7  ;;  %s2709_s0 = sld [smem:[#allocation23_spill]] }
  0x43   : > { %s2391_s25 = scalar_select %p54_p11, %s2199_s29, %s56_s20  }
  0x44   : > { %s327_s26 = scalar_lea.vmem [#allocation6], %s1697_s22  ;;  %p2398_p7 = pnand %p1876_p3, %p65_p10 }
  0x45   : > { %s335_s4 = sshll.u32 %s327_s26, 4  ;;  %s2405_s19 = scalar_lea.hbm %s2682_s1, %s1698_s24  ;;  %s336_s4 = int_to_ptr.vmem [resolvable:$true] %s335_s4 }
  0x46   : > { %s342_s20 = sand.u32 1, %s2211_s10   ;;  %s324_s12 = scalar_lea.sflag [#allocation7], %s323_s16 }
  0x47   : > { %p2065_p1 = pneg %p2398_p7  ;;  %s2076_s21 = scalar_lea.vmem %s336_s4, 128 }
  0x48   : > { %s333_s23 = scalar_lea.hbm %s2709_s0, %s1698_s24  ;;  %p2077_p9 = scmp.ne.s32.totalorder %s336_s4, %s2076_s21 }
  0x49   : > { %s2218_s17 = smov [#allocation6]  }
  0x4a   : > { %p2079_p13 = pnand %p2077_p9, %p2065_p1  ;;  %s2081_s26 = sshll.u32 %s2218_s17, 4  ;;  %s2082_s26 = int_to_ptr.vmem [resolvable:$false] %s2081_s26 }
  0x4b   : > { %s2083_s0 = scalar_lea.vmem %s2082_s26, 256  ;;  %p2084_p4 = scmp.lt.s32.totalorder %s336_s4, %s2082_s26 }
  0x4c   : > { %p2080_p2 = pneg %p2079_p13  ;;  %p2085_p6 = scmp.lt.s32.totalorder %s2083_s0, %s2076_s21 }
  0x4e   : > { %p2086_p12 = por %p2085_p6, %p2084_p4 }
  0x50   : > { %p2087_p0 = pnand %p2086_p12, %p2080_p2 }
  0x52   : > { %2090 = shalt.err (!%p2087_p0)
}
  0x53   : > { %1865 = dma.hbm_to_vmem [thread:$0]  (!%p2398_p7), %s333_s23, 128, %s336_s4, %s324_s12  }
  0x54   : > { %s346_s6 = scalar_lea.vmem [#allocation9], %s1697_s22  ;;  %s343_s16 = scalar_lea.sflag [#allocation10], %s342_s20 }
  0x55   : > { %s354_s14 = sshll.u32 %s346_s6, 4  ;;  %s2219_s17 = smov [#allocation9]   ;;  %s355_s14 = int_to_ptr.vmem [resolvable:$true] %s354_s14 }
  0x56   : > { %s2104_s24 = scalar_lea.vmem %s355_s14, 128  ;;  %s2109_s26 = sshll.u32 %s2219_s17, 4  ;;  %s2110_s26 = int_to_ptr.vmem [resolvable:$false] %s2109_s26 }
  0x57   : > { %p2105_p3 = scmp.ne.s32.totalorder %s355_s14, %s2104_s24  ;;  %s2111_s0 = scalar_lea.vmem %s2110_s26, 256 }
  0x58   : > { %p2112_p9 = scmp.lt.s32.totalorder %s355_s14, %s2110_s26  ;;  %p2113_p13 = scmp.lt.s32.totalorder %s2111_s0, %s2104_s24 }
  0x59   : > { %p2107_p10 = pnand %p2105_p3, %p2065_p1 }
  0x5a   : > { %p2114_p2 = por %p2113_p13, %p2112_p9 }
  0x5b   : > { %p2108_p11 = pneg %p2107_p10 }
  0x5d   : > { %p2115_p4 = pnand %p2114_p2, %p2108_p11 }
  0x5f   : > { %2118 = shalt.err (!%p2115_p4)
}
  0x60   : > { %1868 = dma.hbm_to_vmem [thread:$0]  (!%p2398_p7), %s2405_s19, 128, %s355_s14, %s343_s16  }
  0x61   : > { %363 = sbr.rel (%p2333_p8) target bundleno = 1805 (0x70d), region = 52  ;;  %s2424_s4 = sand.u32 (!%p2333_p8), 1, %s2195_s28  }
  0x62   : > { %s2427_s12 = sshll.u32 (!%p2333_p8), %s2424_s4, 3  ;;  %s366_s22 = scalar_lea.sflag (!%p2333_p8), [#allocation7], %s2424_s4 }
  0x63   : > { %s369_s23 = scalar_lea.vmem (!%p2333_p8), [#allocation6], %s2427_s12  ;;  %p2711_p1 = scmp.ne.s32.totalorder (!%p2333_p8), %s2698_s13, 0 }
  0x66   : > { %2170 = dma.done.wait (%p2711_p1), %s366_s22, 128  }
  0x67   : > { %2172 = vsyncadd (%p2711_p1), %s366_s22, 4294967168  ;;  %s374_s5 = sand.u32 1, %s2314_s11   ;;  %s378_s19 = scalar_lea.vmem [#allocation9], %s2427_s12 }
  0x68   : > { %s375_s15 = scalar_lea.sflag [#allocation10], %s374_s5 }
  0x69   : > { %2174 = dma.done.wait (%p2711_p1), %s375_s15, 128  }
  0x6a   : > { %2176 = vsyncadd (%p2711_p1), %s375_s15, 4294967168  ;;  %p2712_p8 = scmp.eq.s32.totalorder %s2314_s11, 0 }
  0x6c   : > { %2178 = dma.done.wait (%p2712_p8), [#allocation10], 512   ;;  %p2713_p7 = pmov %p2712_p8 }
  0x6e   : > { %2180 = vsyncadd (%p2713_p7), [#allocation10], 4294966784  ;;  %p2714_p6 = pmov %p2713_p7 }
  0x70   : > { %2182 = dma.done.wait (%p2714_p6), [#allocation13], 1024   ;;  %p2715_p12 = pmov %p2714_p6 }
  0x71   : > { %vm435_vm0 = vcmask 261120   ;;  %v434_v0 = vld [vmem:[%s369_s23] sm:$0xff]  ;;  %v546_v1 = vld [vmem:[%s378_s19] sm:$0xff]  ;;  %v2220_v15 = vmov 0.0   ;;  %vm2221_vm1 = vmmov 0   ;;  %vm654_vm2 = vcmask 64512  }
  0x72   : > { %2184 = vsyncadd (%p2715_p12), [#allocation13], 4294966272  ;;  %v436_v2 = vsel %vm435_vm0, %v434_v0, 0.0  ;;  %v548_v3 = vsel %vm435_vm0, %v546_v1, 0.0  ;;  %v467_v14 = vld [vmem:[#allocation11 + $0x18] sm:$0xff]  ;;  %1761 = vmatprep.subr.mxu0 %v2220_v15  ;;  %545 = vst.msk [vmem:[#allocation5] sm:$0xff] %vm435_vm0, %v2220_v15  ;;  %1772 = vmatprep.subr.mxu1 %v2220_v15 }
  0x73   : > { %437 = vadd.xlane.f32.xlu0 %v436_v2  ;;  %v466_v16 = vld [vmem:[#allocation11 + $0x10] sm:$0xff]  ;;  %v579_v17 = vld [vmem:[#allocation12 + $0x18] sm:$0xff]  ;;  %1762 = vmatpush3.msra.mxu0 %v467_v14  ;;  %v465_v19 = vld [vmem:[#allocation11 + $0x8] sm:$0xff]  ;;  %s2222_s6 = smov 120   ;;  %s2223_s14 = smov 104   ;;  %vm542_vm3 = vcmask 31744  }
  0x74   : > { %1773 = vmatpush3.msra.mxu1 %v579_v17  ;;  %v578_v18 = vld [vmem:[#allocation12 + $0x10] sm:$0xff]  ;;  %1763 = vmatprep.subr.mxu0 %v2220_v15  ;;  %v464_v20 = vld [vmem:[#allocation11] sm:$0xff]  ;;  %v577_v21 = vld [vmem:[#allocation12 + $0x8] sm:$0xff]  ;;  %s2224_s16 = smov 112   ;;  %v2225_v52 = vmov -inf   ;;  %544 = vst.msk [vmem:[#allocation4] sm:$0xff] %vm542_vm3, %v2220_v15 }
  0x75   : > { %1774 = vmatprep.subr.mxu1 %v2220_v15  ;;  %1764 = vmatpush3.msra.mxu0 %v466_v16  ;;  %v576_v22 = vld [vmem:[#allocation12] sm:$0xff]  ;;  %543 = vst.msk [vmem:[#allocation3] sm:$0xff] %vm542_vm3, %v2225_v52  ;;  %v2226_v54 = vmov 0   ;;  %vm753_vm4 = vcmask 7168   ;;  %vm941_vm5 = vcmask 15368   ;;  %vm1134_vm6 = vcmask 23568  }
  0x76   : > { %1769 = vmatprep.mubr.msk.f32.mxu0 %vm2221_vm1, %v2220_v15  ;;  %1765 = vmatprep.subr.mxu0 %v2220_v15  ;;  %v1728_v30 = vld [vmem:[%s2683_s2] ss:$0 sm:$0xff]  ;;  %s2229_s24 = smov 96   ;;  %v2230_v14 = vmov 3   ;;  %vm1327_vm7 = vcmask 31768   ;;  %s2231_s17 = smov 88  }
  0x77   : > { %549 = vadd.xlane.f32.xlu0 %v548_v3  ;;  %1775 = vmatpush3.msra.mxu1 %v578_v18  ;;  %v1729_v32 = vld [vmem:[%s2684_s3] ss:$0 sm:$0xff]  ;;  %s2232_s26 = smov 80   ;;  %s2233_s0 = smov 72   ;;  %vm1031_vm8 = vcmask 130112   ;;  %vm1224_vm9 = vcmask 195712  }
  0x78   : > { %1766 = vmatpush3.msra.mxu0 %v465_v19  ;;  %1776 = vmatprep.subr.mxu1 %v2220_v15  ;;  %s2234_s22 = smov 8   ;;  %s2235_s23 = smov 16   ;;  %vm1417_vm10 = vcmask 261312  }
  0x79   : > { %1767 = vmatprep.subr.mxu0 %v2220_v15  ;;  %1780 = vmatprep.mubr.msk.f32.mxu1 %vm2221_vm1, %v2220_v15  ;;  %s2236_s5 = smov 24   ;;  %s1725_s11 = sshll.u32 %s2203_s30, 7 }
  0x7a   : > { %1768 = vmatpush3.msra.mxu0 %v464_v20  ;;  %1777 = vmatpush3.msra.mxu1 %v577_v21  ;;  %s427_s13 = scalar_lea.vmem [#allocation15], %s2427_s12  ;;  %s2237_s30 = smov [#allocation15]  }
  0x7b   : > { %1793 = vmatprep.subr.mxu0 %v2220_v15  ;;  %1778 = vmatprep.subr.mxu1 %v2220_v15  ;;  %s1555_s20 = sshll.u32 %s427_s13, 4  ;;  %s2123_s12 = sshll.u32 %s2237_s30, 4  ;;  %s1556_s20 = int_to_ptr.vmem [resolvable:$true] %s1555_s20  ;;  %s2124_s12 = int_to_ptr.vmem [resolvable:$false] %s2123_s12 }
  0x7c   : > { %1779 = vmatpush3.msra.mxu1 %v576_v22  ;;  %1951 = vset.pattern.permute.xlu0 %v2226_v54  ;;  %p2126_p11 = scmp.lt.s32.totalorder %s1556_s20, %s2124_s12 }
  0x7d   : > { %1783 = vmatprep.subr.mxu1 %v2220_v15 }
  0xfc   : > { %v438_v4 = vpop.xlane.xlu0 %437 }
  0xfd   : > { %v440_v5 = vmul.f32 0.03125, %v438_v4 }
  0xff   : > { %v441_v6 = vsub.f32 %v434_v0, %v440_v5  ;;  %v2227_v0 = vmov 1  }
 0x100   : > { %v550_v7 = vpop.xlane.xlu0 %549  ;;  %1952 = vset.pattern.permute.xlu1 %v2227_v0 }
 0x101   : > { %v552_v8 = vmul.f32 0.03125, %v550_v7  ;;  %v442_v9 = vmul.f32 %v441_v6, %v441_v6 }
 0x103   : > { %v553_v10 = vsub.f32 %v546_v1, %v552_v8  ;;  %v443_v11 = vsel %vm435_vm0, %v442_v9, 0.0  ;;  %v2527_v1 = vld [vmem:[#allocation3] sm:$0xff]  ;;  %v2228_v9 = vmov 2  }
 0x104   : > { %444 = vadd.xlane.f32.xlu1 %v443_v11 }
 0x105   : > { %v554_v12 = vmul.f32 %v553_v10, %v553_v10 }
 0x107   : > { %v555_v13 = vsel %vm435_vm0, %v554_v12, 0.0 }
 0x108   : > { %556 = vadd.xlane.f32.xlu1 %v555_v13 }
 0x18d   : > { %v445_v23 = vpop.xlane.xlu1 %444 }
 0x18e   : > { %v446_v24 = vmul.f32 0.03125, %v445_v23 }
 0x190   : > { %v447_v25 = vadd.f32 1e-05, %v446_v24 }
 0x191   : > { %v557_v26 = vpop.xlane.xlu1 %556 }
 0x192   : > { %1963 = vrsqrt.f32 %v447_v25  ;;  %v558_v27 = vmul.f32 0.03125, %v557_v26 }
 0x194   : > { %v559_v28 = vadd.f32 1e-05, %v558_v27 }
 0x196   : > { %1965 = vrsqrt.f32 %v559_v28 }
 0x19f   : > { %v1964_v29 = vpop.eup %1963 }
 0x1a0   : > { %v449_v31 = vmul.f32 %v1964_v29, %v441_v6 }
 0x1a2   : > { %v456_v33 = vmul.f32 %v1728_v30, %v449_v31 }
 0x1a3   : > { %v1966_v34 = vpop.eup %1965 }
 0x1a4   : > { %v463_v35 = vadd.f32 %v1729_v32, %v456_v33  ;;  %v561_v36 = vmul.f32 %v1966_v34, %v553_v10 }
 0x1a6   : > { %1770 = vmatmul.mubr.msk.f32.vlgmr.msra.gmra.mxu0 %vm435_vm0, %v463_v35  ;;  %v568_v37 = vmul.f32 %v1728_v30, %v561_v36 }
 0x1a7   : > { %1795 = vmatprep.mubr.msk.f32.mxu0 %vm2221_vm1, %v2220_v15 }
 0x1a8   : > { %v575_v38 = vadd.f32 %v1729_v32, %v568_v37 }
 0x1aa   : > { %1781 = vmatmul.mubr.msk.f32.vlgmr.msra.gmra.mxu1 %vm435_vm0, %v575_v38 }
 0x1ab   : > { %1785 = vmatprep.mubr.msk.f32.mxu1 %vm2221_vm1, %v2220_v15 }
 0x266   : > { %v537_v39 = vpop.f32.mrf.mxu0 }
 0x267   : > { %541 = vst.msk [vmem:[#allocation2] sm:$0xff] %vm435_vm0, %v537_v39 }
 0x268   : > { %v1771_v40 = vpop.f32.mrf.mxu0 }
 0x26a   : > { %v2482_v41 = vpop.f32.mrf.mxu1 }
 0x26b   : > { %843 = vrot.lane.b32.xlu0 %v2482_v41, %s2222_s6  ;;  %1784 = vmatpush3.xpose.msk.msra.mxu1 %vm654_vm2, %v2482_v41 }
 0x26c   : > { %v1782_v42 = vpop.f32.mrf.mxu1  ;;  %1788 = vmatprep.subr.mxu1 %v2220_v15 }
 0x26e   : > { %v653_v43 = vld [vmem:[#allocation2] sm:$0xff] }
 0x26f   : > { %1229 = vrot.lane.b32.xlu0 %v2482_v41, %s2223_s14  ;;  %841 = vrot.lane.b32.xlu1 %v653_v43, %s2222_s6 }
 0x270   : > { %1786 = vmatmul.mubr.msk.f32.vlgmr.msra.gmra.mxu1 %vm654_vm2, %v653_v43 }
 0x271   : > { %1790 = vmatprep.mubr.msk.f32.mxu1 %vm2221_vm1, %v2220_v15 }
 0x273   : > { %1036 = vrot.lane.b32.xlu1 %v2482_v41, %s2224_s16 }
 0x277   : > { %1034 = vrot.lane.b32.xlu1 %v653_v43, %s2224_s16  ;;  %s1541_s16 = scalar_lea.sflag [#allocation8], %s2424_s4 }
 0x27b   : > { %1227 = vrot.lane.b32.xlu1 %v653_v43, %s2223_s14  ;;  %s2638_s14 = scalar_lea.hbm %s2689_s8, %s1725_s11 }
 0x2dd   : > { %v844_v44 = vpop.permute.xlu0 %843 }
 0x2de   : > { %1794 = vmatpush3.xpose.msk.msra.mxu0 %vm654_vm2, %v844_v44 }
 0x2df   : > { %1803 = vmatprep.subr.mxu0 %v2220_v15 }
 0x2e1   : > { %v842_v45 = vpop.permute.xlu1 %841  ;;  %v1230_v48 = vpop.permute.xlu0 %1229 }
 0x2e2   : > { %1796 = vmatmul.mubr.msk.f32.vlgmr.msra.gmra.mxu0 %vm654_vm2, %v842_v45 }
 0x2e3   : > { %1805 = vmatprep.mubr.msk.f32.mxu0 %vm2221_vm1, %v2220_v15 }
 0x2e5   : > { %v1037_v46 = vpop.permute.xlu1 %1036 }
 0x2e6   : > { %1804 = vmatpush3.xpose.msk.msra.mxu0 %vm654_vm2, %v1037_v46 }
 0x2e7   : > { %1813 = vmatprep.subr.mxu0 %v2220_v15 }
 0x2e9   : > { %v1035_v47 = vpop.permute.xlu1 %1034 }
 0x2ea   : > { %1806 = vmatmul.mubr.msk.f32.vlgmr.msra.gmra.mxu0 %vm654_vm2, %v1035_v47 }
 0x2eb   : > { %1814 = vmatpush3.xpose.msk.msra.mxu0 %vm654_vm2, %v1230_v48  ;;  %1815 = vmatprep.mubr.msk.f32.mxu0 %vm2221_vm1, %v2220_v15 }
 0x2ec   : > { %1823 = vmatprep.subr.mxu0 %v2220_v15 }
 0x2ed   : > { %v1228_v49 = vpop.permute.xlu1 %1227 }
 0x2ee   : > { %1816 = vmatmul.mubr.msk.f32.vlgmr.msra.gmra.mxu0 %vm654_vm2, %v1228_v49 }
 0x2ef   : > { %1831 = vmatprep.mubr.msk.f32.mxu0 %vm2221_vm1, %v2220_v15 }
 0x330   : > { %v2508_v50 = vpop.f32.mrf.mxu1 }
 0x331   : > { %v732_v51 = vsel %vm654_vm2, %v2508_v50, -inf }
 0x332   : > { %733 = vmax.xlane.f32.xlu0 %v732_v51  ;;  %v1787_v53 = vpop.f32.mrf.mxu1 }
 0x3a2   : > { %v2514_v55 = vpop.f32.mrf.mxu0 }
 0x3a3   : > { %v920_v56 = vsel %vm654_vm2, %v2514_v55, -inf }
 0x3a4   : > { %921 = vmax.xlane.f32.xlu1 %v920_v56  ;;  %v1797_v57 = vpop.f32.mrf.mxu0 }
 0x3aa   : > { %v2518_v58 = vpop.f32.mrf.mxu0 }
 0x3ab   : > { %v1113_v59 = vsel %vm654_vm2, %v2518_v58, -inf }
 0x3ac   : > { %1114 = vmax.xlane.f32.xlu0 %v1113_v59  ;;  %v1807_v60 = vpop.f32.mrf.mxu0 }
 0x3ae   : > { %v2522_v61 = vpop.f32.mrf.mxu0 }
 0x3af   : > { %v1306_v62 = vsel %vm654_vm2, %v2522_v61, -inf }
 0x3b0   : > { %1307 = vmax.xlane.f32.xlu0 %v1306_v62  ;;  %v1817_v63 = vpop.f32.mrf.mxu0 }
 0x3bb   : > { %v734_v2 = vpop.xlane.xlu0 %733 }
 0x3bc   : > { %v2530_v3 = vmax.f32 %v2527_v1, %v734_v2 }
 0x3be   : > { %v736_v4 = vsub.f32 %v2527_v1, %v2530_v3  ;;  %840 = vst.msk [vmem:[#allocation3] sm:$0xff] %vm753_vm4, %v2530_v3 }
 0x3c0   : > { %v737_v42 = vmul.f32 1.442695, %v736_v4 }
 0x3c5   : > { %v2537_v5 = vld [vmem:[#allocation3] sm:$0xff] }
 0x3c6   : > { %741 = vperm.xlu0 %1951, %v2530_v3  }
 0x42d   : > { %v922_v6 = vpop.xlane.xlu1 %921 }
 0x42e   : > { %v2540_v7 = vmax.f32 %v2537_v5, %v922_v6 }
 0x430   : > { %v924_v8 = vsub.f32 %v2537_v5, %v2540_v7  ;;  %1033 = vst.msk [vmem:[#allocation3] sm:$0xff] %vm941_vm5, %v2540_v7  ;;  %929 = vperm.xlu1 %1952, %v2540_v7   ;;  %v755_v5 = vld [vmem:[#allocation5] sm:$0xff] }
 0x432   : > { %v925_v45 = vmul.f32 1.442695, %v924_v8 }
 0x434   : > { %1953 = vset.pattern.permute.xlu1 %v2228_v9 }
 0x435   : > { %v1115_v11 = vpop.xlane.xlu0 %1114 }
 0x437   : > { %v2548_v10 = vld [vmem:[#allocation3] sm:$0xff] }
 0x438   : > { %v2551_v12 = vmax.f32 %v2548_v10, %v1115_v11 }
 0x439   : > { %v1308_v17 = vpop.xlane.xlu0 %1307 }
 0x43a   : > { %v1117_v13 = vsub.f32 %v2548_v10, %v2551_v12  ;;  %1226 = vst.msk [vmem:[#allocation3] sm:$0xff] %vm1134_vm6, %v2551_v12  ;;  %1122 = vperm.xlu1 %1953, %v2551_v12  }
 0x43c   : > { %v1118_v43 = vmul.f32 1.442695, %v1117_v13 }
 0x43e   : > { %762 = vrot.lane.b32.xlu1 %v2482_v41, %s2229_s24  ;;  %s2119_s24 = scalar_lea.vmem %s1556_s20, 128 }
 0x43f   : > { %1954 = vset.pattern.permute.xlu1 %v2230_v14  ;;  %p2120_p0 = scmp.ne.s32.totalorder %s1556_s20, %s2119_s24 }
 0x441   : > { %v2560_v16 = vld [vmem:[#allocation3] sm:$0xff]  ;;  %v742_v20 = vpop.permute.xlu0 %741  ;;  %p2121_p3 = pnand %p2120_p0, %p2379_p5 }
 0x442   : > { %v2563_v18 = vmax.f32 %v2560_v16, %v1308_v17  ;;  %950 = vrot.lane.b32.xlu1 %v2482_v41, %s2231_s17  ;;  %v744_v21 = vsub.f32 %v2508_v50, %v742_v20  ;;  %v747_v50 = vld [vmem:[#allocation4] sm:$0xff]  ;;  %s2125_s17 = scalar_lea.vmem %s2124_s12, 256 }
 0x443   : > { %p2122_p10 = pneg %p2121_p3  ;;  %p2127_p9 = scmp.lt.s32.totalorder %s2125_s17, %s2119_s24 }
 0x444   : > { %v1310_v19 = vsub.f32 %v2560_v16, %v2563_v18  ;;  %1419 = vst.msk [vmem:[#allocation3] sm:$0xff] %vm1327_vm7, %v2563_v18  ;;  %v745_v22 = vmul.f32 1.442695, %v744_v21 }
 0x445   : > { %p2128_p13 = por %p2127_p9, %p2126_p11 }
 0x446   : > { %1315 = vperm.xlu1 %1954, %v2563_v18   ;;  %1967 = vpow2.f32 %v745_v22  ;;  %v1311_v59 = vmul.f32 1.442695, %v1310_v19  ;;  %v1458_v22 = vld [vmem:[#allocation14 + $0x18] sm:$0xff] }
 0x447   : > { %1824 = vmatpush3.msra.mxu0 %v1458_v22  ;;  %p2129_p2 = pnand %p2128_p13, %p2122_p10 }
 0x448   : > { %1825 = vmatprep.subr.mxu0 %v2220_v15 }
 0x44a   : > { %1143 = vrot.lane.b32.xlu1 %v2482_v41, %s2232_s26 }
 0x44b   : > { %1955 = vset.pattern.permute.xlu1 %v2227_v0 }
 0x44e   : > { %1336 = vrot.lane.b32.xlu1 %v2482_v41, %s2233_s0 }
 0x453   : > { %v1968_v23 = vpop.eup %1967 }
 0x454   : > { %v749_v24 = vsel %vm654_vm2, %v1968_v23, 0.0 }
 0x472   : > { %750 = vadd.xlane.f32.xlu1 %v749_v24  ;;  %v1455_v24 = vld [vmem:[#allocation14] sm:$0xff] }
 0x4ab   : > { %v930_v25 = vpop.permute.xlu1 %929 }
 0x4ac   : > { %v932_v26 = vsub.f32 %v2514_v55, %v930_v25 }
 0x4ae   : > { %v933_v27 = vmul.f32 1.442695, %v932_v26 }
 0x4b0   : > { %1969 = vpow2.f32 %v933_v27 }
 0x4b5   : > { %v1123_v28 = vpop.permute.xlu1 %1122 }
 0x4b6   : > { %v1125_v29 = vsub.f32 %v2518_v58, %v1123_v28 }
 0x4b8   : > { %v1126_v30 = vmul.f32 1.442695, %v1125_v29 }
 0x4b9   : > { %v763_v31 = vpop.permute.xlu1 %762 }
 0x4ba   : > { %1971 = vpow2.f32 %v1126_v30  ;;  %1789 = vmatpush3.msra.mxu1 %v763_v31 }
 0x4bb   : > { %1791 = vmatmul.mubr.msk.f32.vlgmr.msra.gmra.mxu1 %vm654_vm2, %v1968_v23  ;;  %1798 = vmatprep.subr.mxu1 %v2220_v15  ;;  %v1457_v23 = vld [vmem:[#allocation14 + $0x10] sm:$0xff] }
 0x4bc   : > { %1800 = vmatprep.mubr.msk.f32.mxu1 %vm2221_vm1, %v2220_v15  ;;  %1826 = vmatpush3.msra.mxu0 %v1457_v23 }
 0x4bd   : > { %v1970_v32 = vpop.eup %1969  ;;  %v951_v33 = vpop.permute.xlu1 %950  ;;  %1827 = vmatprep.subr.mxu0 %v2220_v15 }
 0x4be   : > { %1799 = vmatpush3.msra.mxu1 %v951_v33  ;;  %v937_v34 = vsel %vm654_vm2, %v1970_v32, 0.0 }
 0x4bf   : > { %938 = vadd.xlane.f32.xlu0 %v937_v34  ;;  %1801 = vmatmul.mubr.msk.f32.vlgmr.msra.gmra.mxu1 %vm654_vm2, %v1970_v32 }
 0x4c0   : > { %1808 = vmatprep.subr.mxu1 %v2220_v15  ;;  %1810 = vmatprep.mubr.msk.f32.mxu1 %vm2221_vm1, %v2220_v15 }
 0x4c1   : > { %v1316_v35 = vpop.permute.xlu1 %1315 }
 0x4c2   : > { %v1318_v36 = vsub.f32 %v2522_v61, %v1316_v35 }
 0x4c4   : > { %v1319_v37 = vmul.f32 1.442695, %v1318_v36 }
 0x4c5   : > { %v1144_v38 = vpop.permute.xlu1 %1143 }
 0x4c6   : > { %1973 = vpow2.f32 %v1319_v37  ;;  %1809 = vmatpush3.msra.mxu1 %v1144_v38 }
 0x4c7   : > { %v1972_v39 = vpop.eup %1971  ;;  %1818 = vmatprep.subr.mxu1 %v2220_v15  ;;  %1975 = vpow2.f32 %v737_v42 }
 0x4c8   : > { %1811 = vmatmul.mubr.msk.f32.vlgmr.msra.gmra.mxu1 %vm654_vm2, %v1972_v39  ;;  %v1130_v40 = vsel %vm654_vm2, %v1972_v39, 0.0  ;;  %1977 = vpow2.f32 %v1118_v43 }
 0x4c9   : > { %1131 = vadd.xlane.f32.xlu0 %v1130_v40  ;;  %v1337_v41 = vpop.permute.xlu1 %1336  ;;  %1820 = vmatprep.mubr.msk.f32.mxu1 %vm2221_vm1, %v2220_v15  ;;  %1979 = vpow2.f32 %v925_v45 }
 0x4ca   : > { %1819 = vmatpush3.msra.mxu1 %v1337_v41  ;;  %1981 = vpow2.f32 %v1311_v59 }
 0x4d3   : > { %v1974_v44 = vpop.eup %1973 }
 0x4d4   : > { %1821 = vmatmul.mubr.msk.f32.vlgmr.msra.gmra.mxu1 %vm654_vm2, %v1974_v44  ;;  %v1323_v46 = vsel %vm654_vm2, %v1974_v44, 0.0  ;;  %v1976_v47 = vpop.eup %1975 }
 0x4d5   : > { %1324 = vadd.xlane.f32.xlu1 %v1323_v46  ;;  %v1978_v48 = vpop.eup %1977  ;;  %v748_v51 = vmul.f32 %v1976_v47, %v747_v50  ;;  %v1722_v50 = vld [vmem:[%s2688_s7] ss:$0 sm:$0xff] }
 0x4d6   : > { %v1980_v49 = vpop.eup %1979 }
 0x4df   : > { %758 = vperm.xlu0 %1951, %v1976_v47  }
 0x4e3   : > { %1956 = vset.pattern.permute.xlu0 %v2228_v9 }
 0x4e4   : > { %1139 = vperm.xlu0 %1956, %v1978_v48  }
 0x4e6   : > { %946 = vperm.xlu1 %1955, %v1980_v49  }
 0x4e8   : > { %1959 = vset.pattern.permute.xlu0 %v2227_v0  ;;  %v1982_v0 = vpop.eup %1981 }
 0x4ea   : > { %1957 = vset.pattern.permute.xlu1 %v2230_v14 }
 0x4fb   : > { %v751_v52 = vpop.xlane.xlu1 %750 }
 0x4fc   : > { %v752_v53 = vadd.f32 %v751_v52, %v748_v51 }
 0x4fe   : > { %754 = vst.msk [vmem:[#allocation4] sm:$0xff] %vm753_vm4, %v752_v53 }
 0x505   : > { %v935_v55 = vld [vmem:[#allocation4] sm:$0xff] }
 0x506   : > { %v936_v56 = vmul.f32 %v1980_v49, %v935_v55 }
 0x548   : > { %v939_v57 = vpop.xlane.xlu0 %938 }
 0x549   : > { %v940_v58 = vadd.f32 %v939_v57, %v936_v56 }
 0x54b   : > { %942 = vst.msk [vmem:[#allocation4] sm:$0xff] %vm941_vm5, %v940_v58 }
 0x552   : > { %v1128_v60 = vld [vmem:[#allocation4] sm:$0xff]  ;;  %v1132_v62 = vpop.xlane.xlu0 %1131 }
 0x553   : > { %v1129_v61 = vmul.f32 %v1978_v48, %v1128_v60 }
 0x555   : > { %v1133_v63 = vadd.f32 %v1132_v62, %v1129_v61 }
 0x557   : > { %1135 = vst.msk [vmem:[#allocation4] sm:$0xff] %vm1134_vm6, %v1133_v63 }
 0x55a   : > { %v759_v6 = vpop.permute.xlu0 %758 }
 0x55b   : > { %v761_v7 = vmul.f32 %v759_v6, %v755_v5 }
 0x55e   : > { %v1321_v1 = vld [vmem:[#allocation4] sm:$0xff]  ;;  %v1325_v3 = vpop.xlane.xlu1 %1324 }
 0x55f   : > { %v1322_v2 = vmul.f32 %v1982_v0, %v1321_v1  ;;  %v1140_v28 = vpop.permute.xlu0 %1139 }
 0x561   : > { %v1326_v4 = vadd.f32 %v1325_v3, %v1322_v2 }
 0x563   : > { %1328 = vst.msk [vmem:[#allocation4] sm:$0xff] %vm1327_vm7, %v1326_v4 }
 0x56a   : > { %v1423_v13 = vld [vmem:[#allocation4] sm:$0xff] }
 0x56b   : > { %1983 = vrcp.f32 %v1423_v13 }
 0x578   : > { %v1984_v19 = vpop.eup %1983 }
 0x57b   : > { %v834_v8 = vpop.f32.mrf.mxu1 }
 0x57c   : > { %v838_v10 = vadd.f32 %v834_v8, %v761_v7 }
 0x57d   : > { %v1792_v11 = vpop.f32.mrf.mxu1 }
 0x57e   : > { %839 = vst.msk [vmem:[#allocation5] sm:$0xff] %vm654_vm2, %v838_v10 }
 0x57f   : > { %v1022_v12 = vpop.f32.mrf.mxu1 }
 0x580   : > { %1027 = vrot.lane.b32.xlu1 %v1022_v12, %s2234_s22 }
 0x581   : > { %v1802_v16 = vpop.f32.mrf.mxu1 }
 0x585   : > { %v943_v25 = vld [vmem:[#allocation5] sm:$0xff] }
 0x588   : > { %v1215_v17 = vpop.f32.mrf.mxu1 }
 0x589   : > { %1220 = vrot.lane.b32.xlu1 %v1215_v17, %s2235_s23 }
 0x58a   : > { %v1812_v18 = vpop.f32.mrf.mxu1 }
 0x58d   : > { %1332 = vperm.xlu1 %1957, %v1982_v0  }
 0x591   : > { %1958 = vset.pattern.permute.xlu1 %v2226_v54  ;;  %v1456_v54 = vld [vmem:[#allocation14 + $0x8] sm:$0xff] }
 0x592   : > { %1428 = vperm.xlu1 %1958, %v1984_v19   ;;  %1828 = vmatpush3.msra.mxu0 %v1456_v54 }
 0x593   : > { %1829 = vmatprep.subr.mxu0 %v2220_v15 }
 0x594   : > { %v1408_v20 = vpop.f32.mrf.mxu1  ;;  %1830 = vmatpush3.msra.mxu0 %v1455_v24 }
 0x595   : > { %1413 = vrot.lane.b32.xlu0 %v1408_v20, %s2236_s5 }
 0x596   : > { %v1822_v21 = vpop.f32.mrf.mxu1  ;;  %1960 = vset.pattern.permute.xlu1 %v2228_v9  ;;  %v947_v9 = vpop.permute.xlu1 %946 }
 0x597   : > { %1442 = vperm.xlu1 %1960, %v1984_v19   ;;  %v949_v26 = vmul.f32 %v947_v9, %v943_v25 }
 0x599   : > { %1435 = vperm.xlu0 %1959, %v1984_v19  }
 0x59b   : > { %1961 = vset.pattern.permute.xlu1 %v2230_v14 }
 0x59c   : > { %1449 = vperm.xlu1 %1961, %v1984_v19  }
 0x59d   : > { %1962 = vset.pattern.permute.xlu0 %v2230_v14 }
 0x5f2   : > { %v1028_v27 = vpop.permute.xlu1 %1027 }
 0x5f3   : > { %v1030_v14 = vadd.f32 %v1028_v27, %v949_v26 }
 0x5f5   : > { %1032 = vst.msk [vmem:[#allocation5] sm:$0xff] %vm1031_vm8, %v1030_v14 }
 0x5fb   : > { %v1221_v31 = vpop.permute.xlu1 %1220 }
 0x5fc   : > { %v1136_v29 = vld [vmem:[#allocation5] sm:$0xff] }
 0x5fd   : > { %v1142_v30 = vmul.f32 %v1140_v28, %v1136_v29 }
 0x5ff   : > { %v1223_v32 = vadd.f32 %v1221_v31, %v1142_v30 }
 0x601   : > { %1225 = vst.msk [vmem:[#allocation5] sm:$0xff] %vm1224_vm9, %v1223_v32 }
 0x607   : > { %v1414_v35 = vpop.permute.xlu0 %1413 }
 0x608   : > { %v1333_v33 = vpop.permute.xlu1 %1332  ;;  %v1329_v34 = vld [vmem:[#allocation5] sm:$0xff] }
 0x609   : > { %v1335_v15 = vmul.f32 %v1333_v33, %v1329_v34 }
 0x60b   : > { %v1416_v36 = vadd.f32 %v1414_v35, %v1335_v15 }
 0x60d   : > { %1418 = vst.msk [vmem:[#allocation5] sm:$0xff] %vm1417_vm10, %v1416_v36  ;;  %v1429_v37 = vpop.permute.xlu1 %1428 }
 0x612   : > { %v1443_v43 = vpop.permute.xlu1 %1442 }
 0x614   : > { %v1425_v38 = vld [vmem:[#allocation5] sm:$0xff]  ;;  %v1436_v41 = vpop.permute.xlu0 %1435 }
 0x615   : > { %v1431_v39 = vmul.f32 %v1429_v37, %v1425_v38 }
 0x617   : > { %1432 = vst.msk [vmem:[#allocation5] sm:$0xff] %vm654_vm2, %v1431_v39  ;;  %v1450_v46 = vpop.permute.xlu1 %1449 }
 0x61e   : > { %v1433_v40 = vld [vmem:[#allocation5] sm:$0xff] }
 0x61f   : > { %v1438_v42 = vmul.f32 %v1436_v41, %v1433_v40 }
 0x621   : > { %1439 = vst.msk [vmem:[#allocation5] sm:$0xff] %vm1031_vm8, %v1438_v42 }
 0x628   : > { %v1440_v44 = vld [vmem:[#allocation5] sm:$0xff] }
 0x629   : > { %v1445_v45 = vmul.f32 %v1443_v43, %v1440_v44 }
 0x62b   : > { %1446 = vst.msk [vmem:[#allocation5] sm:$0xff] %vm1224_vm9, %v1445_v45 }
 0x632   : > { %v1447_v47 = vld [vmem:[#allocation5] sm:$0xff] }
 0x633   : > { %v1452_v48 = vmul.f32 %v1450_v46, %v1447_v47 }
 0x635   : > { %1453 = vst.msk [vmem:[#allocation5] sm:$0xff] %vm1417_vm10, %v1452_v48 }
 0x63c   : > { %v1454_v49 = vld [vmem:[#allocation5] sm:$0xff] }
 0x63d   : > { %1832 = vmatmul.mubr.msk.f32.vlgmr.msra.gmra.mxu0 %vm435_vm0, %v1454_v49 }
 0x6fd   : > { %v1535_v51 = vpop.f32.mrf.mxu0 }
 0x6fe   : > { %v1536_v52 = vadd.f32 %v1722_v50, %v1535_v51 }
 0x6ff   : > { %v1833_v53 = vpop.f32.mrf.mxu0 }
 0x700   : > { %1539 = vst.msk [vmem:[%s427_s13] sm:$0xff] %vm435_vm0, %v1536_v52 }
 0x701   : > { %2132 = shalt.err (!%p2129_p2)
}
 0x702   : > { %s2133_s26 = scalar_lea.hbm %s2638_s14, 128  ;;  %s2137_s22 = scalar_lea.hbm %s2689_s8, 256 }
 0x703   : > { %p2134_p4 = scmp.ne.s32.totalorder %s2638_s14, %s2133_s26  ;;  %p2138_p7 = scmp.lt.s32.totalorder %s2638_s14, %s2689_s8 }
 0x704   : > { %p2139_p6 = scmp.lt.s32.totalorder %s2137_s22, %s2133_s26 }
 0x705   : > { %p2135_p1 = pnand %p2134_p4, %p2379_p5 }
 0x706   : > { %p2140_p12 = por %p2139_p6, %p2138_p7 }
 0x707   : > { %p2136_p8 = pneg %p2135_p1 }
 0x709   : > { %p2141_p0 = pnand %p2140_p12, %p2136_p8 }
 0x70b   : > { %2144 = shalt.err (!%p2141_p0)
}
 0x70c   : > { %1850 = dma.vmem_to_hbm [thread:$0]  (%p2379_p5), %s1556_s20, 128, %s2638_s14, %s1541_s16  }
 0x70d PF: > { %s2716_s15 = sld [smem:[#allocation21_spill]]  ;;  %s1567_s19 = sand.u32 1, %s2191_s27  }
 0x70e   : > { %p2718_p10 = scmp.ge.s32.totalorder %s2211_s10, 2  ;;  %s1568_s11 = scalar_lea.sflag [#allocation8], %s1567_s19 }
 0x713   : > { %p2717_p3 = scmp.ne.s32.totalorder %s2716_s15, 0 }
 0x715   : > { %p1870_p11 = pnand %p2718_p10, %p2717_p3 }
 0x717   : > { %p1871_p9 = pneg %p1870_p11 }
 0x719   : > { %2186 = dma.done.wait (%p1871_p9), %s1568_s11, 128  }
 0x71a   : > { %2188 = vsyncadd (%p1871_p9), %s1568_s11, 4294967168  ;;  %s28_s10 = sadd.s32 1, %s2211_s10   ;;  %s2719_s18 = sld [smem:[#allocation22_spill]] }
 0x71b   : > { %p25_p13 = scmp.ge.s32.totalorder %s28_s10, 4   ;;  %s2720_s27 = smov %s2195_s28 }
 0x71c   : > { %s2721_s28 = smov %s2199_s29  ;;  %s2722_s29 = smov %s2391_s25 }
 0x71d   : > { %s2723_s30 = smov %s2207_s9  ;;  %27 = sbr.rel (!%p25_p13) target bundleno = 14 (0xe), region = 130 }
 0x720   : > { %s2724_s9 = smov %s2719_s18 }
 0x722   :  { %1573 = vsyncpa [#allocation7], 1 }
 0x723   :  { %1575 = vsyncpa [#allocation7 + $0x1], 1 }
 0x724   :  { %1576 = vsyncpa [#allocation10], 1 }
 0x725   :  { %1578 = vsyncpa [#allocation10 + $0x1], 1 }
 0x726   :  { %1579 = vsyncpa [#allocation13], 1 }
 0x727   :  { %1580 = vsyncpa [#allocation8], 1 }
 0x728   :  { %1582 = vsyncpa [#allocation8 + $0x1], 1 }

</bundles_post_ra>
